<compile_context>
chip_gen: v7x
topology: tpu7x:2x2x1
jax: 0.10.0
libtpu: 0.0.40
codegen_flags: <defaults>
</compile_context>

<pallas_src>
import jax
import jax.numpy as jnp
from jax.experimental import pallas as pl
from jax.experimental.pallas import tpu as pltpu

COUT_PAD = 128  # lane-dense padded output width (Cout <= 128)


def _round_up(a, b):
    return (a + b - 1) // b * b


def _choose_tiles(n):
    """Return (n_pad, tm, tk) for the fused GCN kernel."""
    if n <= 2048:
        # Small graph: minimal layout padding (multiple of 128), ONE reduction
        # tile and TWO row tiles (even megacore split on v7x).
        n_pad = _round_up(n, 128)
        tm = n_pad if n_pad <= 128 else n_pad // 2  # multiple of 64 -> ok for sublanes
        return n_pad, tm, n_pad
    # Larger graphs: 512-row tiles; reduction tile is the largest of
    # {2048, 1024, 512} that divides the (multiple-of-512) padded size.
    n_pad = _round_up(n, 512)
    tk = 512
    for cand in (2048, 1024):
        if n_pad % cand == 0:
            tk = cand
            break
    return n_pad, 512, tk


def _gcn_fused_kernel(adj_ref, x_ref, w_ref, b_ref, o_ref, acc_ref):
    k = pl.program_id(1)

    @pl.when(k == 0)
    def _():
        acc_ref[...] = jnp.zeros_like(acc_ref)

    # Feature transform for this reduction tile, fused into the aggregation.
    # (Recomputed per row tile: the X tile is smaller than an XW tile and the
    # kernel has large MXU slack, so this trades free compute for HBM bytes.)
    xw = jnp.dot(
        x_ref[...], w_ref[...], preferred_element_type=jnp.float32
    ).astype(adj_ref.dtype)

    acc_ref[...] += jnp.dot(
        adj_ref[...], xw, preferred_element_type=jnp.float32
    )

    @pl.when(k == pl.num_programs(1) - 1)
    def _():
        o_ref[...] = (acc_ref[...] + b_ref[...]).astype(o_ref.dtype)


def build_normalized_adjacency(n, edge_index, n_pad=None, dtype=jnp.bfloat16):
    """Dense A_hat = D^-1/2 (A + I) D^-1/2, zero-padded to (n_pad, n_pad).

    Build once and pass to gcn_conv(adj=...) for GCNConv(cached=True)
    behavior (no per-call scatter rebuild).
    """
    if n_pad is None:
        n_pad = n
    src, dst = edge_index[0], edge_index[1]
    loop = jnp.arange(n, dtype=edge_index.dtype)
    src = jnp.concatenate([src, loop])
    dst = jnp.concatenate([dst, loop])
    deg = jnp.zeros((n,), jnp.float32).at[dst].add(1.0)
    dinv_sqrt = jax.lax.rsqrt(jnp.maximum(deg, 1.0))  # deg >= 1 (self loops)
    norm = dinv_sqrt[dst] * dinv_sqrt[src]
    adj = jnp.zeros((n_pad, n_pad), jnp.float32).at[dst, src].add(norm)
    # TODO(synk): replace dense A_hat with a CSR / scalar-prefetched neighbor
    # gather (PrefetchScalarGridSpec) so HBM traffic scales with E not N^2.
    return adj.astype(dtype)


def gcn_conv(x, edge_index, weight, bias, adj=None):
    """GCNConv forward. x: [N, Cin], edge_index: [2, E] int32,
    weight: [Cin, Cout], bias: [Cout]. Optional precomputed padded A_hat."""
    n, cin = x.shape
    cout = weight.shape[1]
    assert cout <= COUT_PAD, "Cout > 128 needs a wider / tiled output slab"

    n_pad, tm, tk = _choose_tiles(n)

    if adj is None:
        adj = build_normalized_adjacency(n, edge_index, n_pad=n_pad)
    assert adj.shape == (n_pad, n_pad)

    # bf16 MXU inputs (f32 accumulation in-kernel); bias stays f32.
    x_p = jnp.pad(x.astype(jnp.bfloat16), ((0, n_pad - n), (0, 0)))
    w_p = jnp.pad(weight.astype(jnp.bfloat16), ((0, 0), (0, COUT_PAD - cout)))
    b_p = jnp.pad(bias.astype(jnp.float32), (0, COUT_PAD - cout)).reshape(
        1, COUT_PAD)

    n_row = n_pad // tm
    n_k = n_pad // tk

    out_p = pl.pallas_call(
        _gcn_fused_kernel,
        out_shape=jax.ShapeDtypeStruct((n_pad, COUT_PAD), jnp.float32),
        grid_spec=pltpu.PrefetchScalarGridSpec(
            num_scalar_prefetch=0,
            grid=(n_row, n_k),
            in_specs=[
                pl.BlockSpec((tm, tk), lambda i, k: (i, k)),         # A_hat
                pl.BlockSpec((tk, cin), lambda i, k: (k, 0)),        # X
                pl.BlockSpec((cin, COUT_PAD), lambda i, k: (0, 0)),  # W
                pl.BlockSpec((1, COUT_PAD), lambda i, k: (0, 0)),    # bias
            ],
            out_specs=pl.BlockSpec((tm, COUT_PAD), lambda i, k: (i, 0)),
            scratch_shapes=[pltpu.VMEM((tm, COUT_PAD), jnp.float32)],
        ),
        compiler_params=pltpu.CompilerParams(
            dimension_semantics=("parallel", "arbitrary")),
        cost_estimate=pl.CostEstimate(
            flops=2 * n_pad * n_pad * COUT_PAD
            + 2 * n_row * n_pad * cin * COUT_PAD,
            transcendentals=0,
            bytes_accessed=n_pad * n_pad * 2            # A_hat (bf16)
            + n_row * n_pad * cin * 2                    # X re-read per row tile
            + cin * COUT_PAD * 2 + COUT_PAD * 4          # W + bias
            + n_pad * COUT_PAD * 4),                     # output (f32)
    )(adj, x_p, w_p, b_p)

    return out_p[:n, :cout]


def linear_encoder_forward(x, edge_index, weight, bias):
    """LinearEncoder.forward -> (GCNConv(x, edge_index), 0)"""
    return gcn_conv(x, edge_index, weight, bias), 0


if __name__ == "__main__":
    # Ring graph (both directions), 600 nodes, 32 -> 8 dims.
    N, C_IN, C_OUT = 600, 32, 8

    key = jax.random.PRNGKey(0)
    kx, kw, kb = jax.random.split(key, 3)

    x = jax.random.normal(kx, (N, C_IN), dtype=jnp.float32)

    i = jnp.arange(N, dtype=jnp.int32)
    src = jnp.concatenate([i, (i + 1) % N])
    dst = jnp.concatenate([(i + 1) % N, i])
    edge_index = jnp.stack([src, dst])  # [2, 2N]

    limit = (6.0 / (C_IN + C_OUT)) ** 0.5
    weight = jax.random.uniform(kw, (C_IN, C_OUT), jnp.float32, -limit, limit)
    bias = 0.1 * jax.random.normal(kb, (C_OUT,), dtype=jnp.float32)

    out, zero = linear_encoder_forward(x, edge_index, weight, bias)
    out = jax.block_until_ready(out)

    # Pure-JAX f32 reference.
    loop = jnp.arange(N, dtype=jnp.int32)
    s = jnp.concatenate([edge_index[0], loop])
    d = jnp.concatenate([edge_index[1], loop])
    deg = jnp.zeros((N,), jnp.float32).at[d].add(1.0)
    dis = deg ** -0.5
    adj_ref = jnp.zeros((N, N), jnp.float32).at[d, s].add(dis[d] * dis[s])
    ref = adj_ref @ (x @ weight) + bias[None, :]

    assert out.shape == (N, C_OUT)
    assert zero == 0
    # bf16 adjacency / features on the MXU (f32 accumulation) -> relaxed
    # tolerance versus the full-f32 reference.
    err = float(jnp.max(jnp.abs(out - ref)))
    assert jnp.allclose(out, ref, atol=5e-2, rtol=5e-2), err

    print("KERNEL_OK")
</pallas_src>

<mosaic_0001>
module attributes {stable_mosaic.version = 11 : i64} {
  func.func @_gcn_fused_kernel(%arg0: i32, %arg1: i32, %arg2: memref<320x640xbf16, #tpu.memory_space<vmem>>, %arg3: memref<640x32xbf16, #tpu.memory_space<vmem>>, %arg4: memref<32x128xbf16, #tpu.memory_space<vmem>>, %arg5: memref<1x128xf32, #tpu.memory_space<vmem>>, %arg6: memref<320x128xf32, #tpu.memory_space<vmem>>, %arg7: memref<320x128xf32, #tpu.memory_space<vmem>>) attributes {dimension_semantics = [#tpu.dimension_semantics<parallel>, #tpu.dimension_semantics<arbitrary>], iteration_bounds = array<i64: 2, 1>, scalar_prefetch = 0 : i64, scratch_operands = 1 : i64, tpu.core_type = #tpu.core_type<tc>, window_params = [{transform_indices = @transform_0, window_bounds = array<i64: 320, 640>}, {transform_indices = @transform_1, window_bounds = array<i64: 640, 32>}, {pipeline_mode = #tpu.pipeline_mode<synchronous>, transform_indices = @transform_2, window_bounds = array<i64: 32, 128>}, {pipeline_mode = #tpu.pipeline_mode<synchronous>, transform_indices = @transform_3, window_bounds = array<i64: 1, 128>}, {transform_indices = @transform_4, window_bounds = array<i64: 320, 128>}]} {
    %c0_i32 = arith.constant 0 : i32
    %0 = arith.cmpi eq, %arg1, %c0_i32 : i32
    %1 = arith.extui %0 : i1 to i32
    %c0_i32_0 = arith.constant 0 : i32
    %2 = arith.cmpi ne, %1, %c0_i32_0 : i32
    scf.if %2 {
      %cst_13 = arith.constant 0.000000e+00 : f32
      %15 = vector.broadcast %cst_13 : f32 to vector<320x128xf32>
      %c0_14 = arith.constant 0 : index
      %c0_15 = arith.constant 0 : index
      %16 = vector.load %arg7[%c0_14, %c0_15] : memref<320x128xf32, #tpu.memory_space<vmem>>, vector<320x128xf32>
      tpu.vector_store %arg7[%c0_14, %c0_15], %15 {strides = array<i32>} : memref<320x128xf32, #tpu.memory_space<vmem>>, vector<320x128xf32>,
    } else {
    }
    %c0 = arith.constant 0 : index
    %c0_1 = arith.constant 0 : index
    %3 = vector.load %arg3[%c0, %c0_1] : memref<640x32xbf16, #tpu.memory_space<vmem>>, vector<640x32xbf16>
    %c0_2 = arith.constant 0 : index
    %c0_3 = arith.constant 0 : index
    %4 = vector.load %arg4[%c0_2, %c0_3] : memref<32x128xbf16, #tpu.memory_space<vmem>>, vector<32x128xbf16>
    %cst = arith.constant dense<0.000000e+00> : vector<640x128xf32>
    %5 = tpu.matmul %3, %4, %cst {dimension_numbers = #tpu.dot_dimension_numbers<[1], [0], [0], [1], [0, 0, 1, 1], [], []>} : vector<640x32xbf16>, vector<32x128xbf16>, vector<640x128xf32> -> vector<640x128xf32>
    %6 = arith.truncf %5 : vector<640x128xf32> to vector<640x128xbf16>
    %c0_4 = arith.constant 0 : index
    %c0_5 = arith.constant 0 : index
    %7 = vector.load %arg7[%c0_4, %c0_5] : memref<320x128xf32, #tpu.memory_space<vmem>>, vector<320x128xf32>
    %c0_6 = arith.constant 0 : index
    %c0_7 = arith.constant 0 : index
    %8 = vector.load %arg2[%c0_6, %c0_7] : memref<320x640xbf16, #tpu.memory_space<vmem>>, vector<320x640xbf16>
    %cst_8 = arith.constant dense<0.000000e+00> : vector<320x128xf32>
    %9 = tpu.matmul %8, %6, %cst_8 {dimension_numbers = #tpu.dot_dimension_numbers<[1], [0], [0], [1], [0, 0, 1, 1], [], []>} : vector<320x640xbf16>, vector<640x128xbf16>, vector<320x128xf32> -> vector<320x128xf32>
    %10 = arith.addf %7, %9 : vector<320x128xf32>
    %c0_9 = arith.constant 0 : index
    %c0_10 = arith.constant 0 : index
    %11 = vector.load %arg7[%c0_9, %c0_10] : memref<320x128xf32, #tpu.memory_space<vmem>>, vector<320x128xf32>
    tpu.vector_store %arg7[%c0_9, %c0_10], %10 {strides = array<i32>} : memref<320x128xf32, #tpu.memory_space<vmem>>, vector<320x128xf32>,
    %c0_i32_11 = arith.constant 0 : i32
    %12 = arith.cmpi eq, %arg1, %c0_i32_11 : i32
    %13 = arith.extui %12 : i1 to i32
    %c0_i32_12 = arith.constant 0 : i32
    %14 = arith.cmpi ne, %13, %c0_i32_12 : i32
    scf.if %14 {
      %c0_13 = arith.constant 0 : index
      %c0_14 = arith.constant 0 : index
      %15 = vector.load %arg7[%c0_13, %c0_14] : memref<320x128xf32, #tpu.memory_space<vmem>>, vector<320x128xf32>
      %c0_15 = arith.constant 0 : index
      %c0_16 = arith.constant 0 : index
      %16 = vector.load %arg5[%c0_15, %c0_16] : memref<1x128xf32, #tpu.memory_space<vmem>>, vector<1x128xf32>
      %17 = vector.broadcast %16 : vector<1x128xf32> to vector<320x128xf32>
      %18 = arith.addf %15, %17 : vector<320x128xf32>
      %c0_17 = arith.constant 0 : index
      %c0_18 = arith.constant 0 : index
      %19 = vector.load %arg6[%c0_17, %c0_18] : memref<320x128xf32, #tpu.memory_space<vmem>>, vector<320x128xf32>
      tpu.vector_store %arg6[%c0_17, %c0_18], %18 {strides = array<i32>} : memref<320x128xf32, #tpu.memory_space<vmem>>, vector<320x128xf32>,
    } else {
    }
    return
  }
  func.func @transform_0(%arg0: i32, %arg1: i32) -> (i32, i32) {
    %c0_i32 = arith.constant 0 : i32
    return %arg0, %arg1 : i32, i32
  }
  func.func @transform_1(%arg0: i32, %arg1: i32) -> (i32, i32) {
    %c0_i32 = arith.constant 0 : i32
    %c0_i32_0 = arith.constant 0 : i32
    return %arg1, %c0_i32 : i32, i32
  }
  func.func @transform_2(%arg0: i32, %arg1: i32) -> (i32, i32) {
    %c0_i32 = arith.constant 0 : i32
    %c0_i32_0 = arith.constant 0 : i32
    %c0_i32_1 = arith.constant 0 : i32
    return %c0_i32, %c0_i32_0 : i32, i32
  }
  func.func @transform_3(%arg0: i32, %arg1: i32) -> (i32, i32) {
    %c0_i32 = arith.constant 0 : i32
    %c0_i32_0 = arith.constant 0 : i32
    %c0_i32_1 = arith.constant 0 : i32
    return %c0_i32, %c0_i32_0 : i32, i32
  }
  func.func @transform_4(%arg0: i32, %arg1: i32) -> (i32, i32) {
    %c0_i32 = arith.constant 0 : i32
    %c0_i32_0 = arith.constant 0 : i32
    return %arg0, %c0_i32 : i32, i32
  }
}

</mosaic_0001>

<bundles_post_ra>
// kernel: tpu_custom_call.1
= control target key start
LH: loop header
LB: loop body
LE: loop exit
PB: predicated region body
PF: predicated region fallthrough
CT: control target
= control target key end

     0   :  { %9 = vsyncpa [#allocation4], 0  ;;  %s4284_s0 = inlined_call_operand.hbm [shape: bf16[640,640], index: 0, kind: input, shape index: {}]   ;;  %s4285_s1 = inlined_call_operand.vmem [shape: bf16[640,32], index: 1, kind: input, shape index: {}]   ;;  %s4286_s2 = inlined_call_operand.vmem [shape: bf16[32,128], index: 2, kind: input, shape index: {}]   ;;  %s4287_s3 = inlined_call_operand.vmem [shape: f32[1,128], index: 3, kind: input, shape index: {}]   ;;  %s4288_s4 = inlined_call_operand.hbm [shape: f32[640,128], index: 4, kind: output, shape index: {}]  }
   0x1   :  { %11 = vsyncpa [#allocation4 + $0x1], 0 }
   0x2   :  { %12 = vsyncpa [#allocation5], 0 }
   0x3   :  { %14 = vsyncpa [#allocation5 + $0x1], 0  ;;  %s3595_s15 = smov 0   ;;  %s3597_s16 = smov 0  }
   0x4   :  { %s3599_s17 = smov 0   ;;  %s3601_s18 = smov 0  }
   0x5   :  { %s3603_s19 = smov 0   ;;  %s3605_s20 = smov 0  }
   0x6 LB: > { %s2695_s21 = sadd.s32 4294967295, %s3561_s20   ;;  %s2696_s22 = sadd.s32 4294967294, %s3561_s20   ;;  %s3561_s20 = sphi %s3605_s20, %s20_s20   ;;  %s3557_s19 = sphi %s3603_s19, %s4302_s19   ;;  %s3553_s18 = sphi %s3601_s18, %s4301_s18   ;;  %s3549_s17 = sphi %s3599_s17, %s4300_s17   ;;  %s3545_s16 = sphi %s3597_s16, %s4299_s16   ;;  %s3541_s15 = sphi %s3595_s15, %s4298_s15  }
   0x7   : > { %s32_s23 = sadd.s32 1, %s3557_s19  ;;  %s41_s24 = sadd.s32 1, %s3549_s17 }
   0x8   : > { %p34_p0 = scmp.ge.s32.totalorder %s32_s23, 2  ;;  %p48_p1 = scmp.ne.s32.totalorder %s3549_s17, %s3545_s16 }
   0x9   : > { %p49_p2 = scmp.eq.s32.totalorder %s3561_s20, 0  ;;  %p54_p3 = scmp.ne.s32.totalorder %s3545_s16, %s3541_s15 }
   0xa   : > { %s4304_s23 = smov (%p34_p0, %s32_s23), 0  ;;  %p55_p5 = scmp.eq.s32.totalorder %s2695_s21, 0 }
   0xb   : > { %p3636_p4 = por %p49_p2, %p48_p1  ;;  %s36_s26 = ssub.s32 %s3557_s19, %s4304_s23 }
   0xc   : > { %p146_p6 = scmp.eq.s32.totalorder %s2695_s21, 1  ;;  %p39_p7 = scmp.eq.s32.totalorder %s36_s26, 0 }
   0xd   : > { %p3642_p8 = por %p55_p5, %p54_p3  ;;  %p152_p10 = scmp.eq.s32.totalorder %s2696_s22, 1 }
   0xe   : > { %p3646_p9 = por %p146_p6, %p48_p1  ;;  %p3211_p13 = scmp.lt.s32.totalorder %s3561_s20, 2 }
   0xf   : > { %s3651_s29 = scalar_select %p39_p7, %s3549_s17, %s41_s24  }
  0x10   : > { %s4292_s28 = scalar_select %p3646_p9, 1, 0 }
  0x11   : > { %p3653_p11 = por %p152_p10, %p54_p3  ;;  %s187_s5 = sand.u32 1, %s3549_s17  }
  0x12   : > { %s3195_s6 = smul.u32 800, %s187_s5  ;;  %p3662_p0 = pnand %p3211_p13, %p3636_p4 }
  0x13   : > { %s4293_s30 = scalar_select %p3653_p11, 1, 0 }
  0x14   : > { %s3212_s8 = smul.u32 12800, %s3557_s19  ;;  %s191_s9 = scalar_lea.vmem [#allocation3], %s3195_s6 }
  0x15   : > { %s201_s10 = sshll.u32 %s191_s9, 4  ;;  %s3674_s14 = scalar_lea.sflag [#allocation4], %s187_s5  ;;  %s3672_s10 = int_to_ptr.vmem [resolvable:$true] %s201_s10 }
  0x16   : > { %s3670_s13 = scalar_lea.hbm %s4284_s0, %s3212_s8  ;;  %p3451_p2 = pneg %p3662_p0 }
  0x17   : > { %s3449_s21 = scalar_lea.hbm %s3670_s13, 12800  ;;  %s3454_s25 = scalar_lea.hbm %s4284_s0, 25600 }
  0x18   : > { %p3450_p1 = scmp.ne.s32.totalorder %s3670_s13, %s3449_s21  ;;  %p3455_p5 = scmp.lt.u32.totalorder %s3670_s13, %s4284_s0 }
  0x19   : > { %p3456_p6 = scmp.lt.u32.totalorder %s3454_s25, %s3449_s21  ;;  %p3458_p10 = scmp.lt.u32.totalorder %s3449_s21, %s3670_s13 }
  0x1a   : > { %p3452_p3 = pnand %p3451_p2, %p3450_p1 }
  0x1b   : > { %p3457_p7 = por %p3456_p6, %p3455_p5 }
  0x1c   : > { %p3453_p4 = pneg %p3452_p3 }
  0x1d   : > { %p3459_p13 = por %p3458_p10, %p3457_p7 }
  0x1f   : > { %p3460_p12 = pnand %p3459_p13, %p3453_p4 }
  0x21   : > { %3463 = shalt.err (!%p3460_p12)
}
  0x22   : > { %s3464_s5 = scalar_lea.vmem %s3672_s10, 12800  ;;  %s3563_s8 = smov [#allocation3]  }
  0x23   : > { %p3465_p1 = scmp.ne.s32.totalorder %s3672_s10, %s3464_s5  ;;  %s3469_s9 = sshll.u32 %s3563_s8, 4  ;;  %s3470_s9 = int_to_ptr.vmem [resolvable:$false] %s3469_s9 }
  0x24   : > { %s3471_s11 = scalar_lea.vmem %s3470_s9, 25600  ;;  %p3472_p9 = scmp.lt.s32.totalorder %s3672_s10, %s3470_s9 }
  0x25   : > { %p3467_p3 = pnand %p3465_p1, %p3451_p2  ;;  %p3473_p5 = scmp.lt.s32.totalorder %s3471_s11, %s3464_s5 }
  0x27   : > { %p3468_p11 = pneg %p3467_p3  ;;  %p3474_p6 = por %p3473_p5, %p3472_p9 }
  0x29   : > { %p3475_p7 = pnand %p3474_p6, %p3468_p11 }
  0x2b   : > { %3478 = shalt.err (!%p3475_p7)
}
  0x2c   : > { %s3564_s12 = smov 320   ;;  %s3565_s21 = smov 20  }
  0x2d   : > { %3206 = dma.hbm_to_vmem [thread:$0]  (!%p3662_p0), %s3670_s13, 12800, %s3672_s10, %s3674_s14, %s3564_s12, %s3564_s12, %s3565_s21  }
  0x2e   : > { %p2701_p12 = scmp.ge.s32.totalorder %s3561_s20, 1  ;;  %p209_p2 = scmp.lt.s32.totalorder %s3561_s20, 3 }
  0x30   : > { %p210_p4 = pnand %p2701_p12, %p209_p2 }
  0x31   : > { %s3705_s22 = sand.u32 (!%p210_p4), 1, %s3545_s16  }
  0x32   : > { %213 = sbr.rel (%p210_p4) target bundleno = 828 (0x33c), region = 36  ;;  %s216_s25 = scalar_lea.sflag (!%p210_p4), [#allocation4], %s3705_s22 }
  0x33   : > { %s3197_s24 = smul.u32 (!%p210_p4), 800, %s3705_s22 }
  0x35   : > { %s3709_s26 = scalar_lea.vmem (!%p210_p4), [#allocation3], %s3197_s24 }
  0x39   : > { %3532 = dma.done.wait (%p3642_p8), %s216_s25, 12800  }
  0x3a   : > { %3534 = vsyncadd (%p3642_p8), %s216_s25, 4294954496  ;;  %v3267_v0 = vld [vmem:[%s4286_s2] sm:$0xff]   ;;  %v3268_v1 = vld [vmem:[%s4286_s2 + $0x8] sm:$0xff]   ;;  %vm599_vm0 = vcmask 261120   ;;  %v3566_v27 = vmov 0   ;;  %s2888_s14 = smul.u32 5120, %s3553_s18 }
  0x3b   : > { %2959 = vmatprep.subr.bf16.mxu0 %v3267_v0  ;;  %v3269_v2 = vld [vmem:[%s4285_s1] sm:$0xff]   ;;  %v3270_v3 = vld [vmem:[%s4285_s1 + $0x8] sm:$0xff]   ;;  %v3271_v4 = vld [vmem:[%s4285_s1 + $0x10] sm:$0xff]   ;;  %3099 = vmatprep.subr.bf16.mxu1 %v3566_v27  ;;  %s2583_s18 = scalar_lea.sflag [#allocation5], %s3705_s22  ;;  %p4295_p9 = scmp.ne.s32.totalorder %s4292_s28, 0 }
  0x3c   : > { %2960 = vmatpush3.bf16.msra.mxu0 %v3267_v0  ;;  %2963 = vmatprep.mubr.msk.bf16.mxu0 %vm599_vm0, %v3269_v2  ;;  %v3272_v5 = vld [vmem:[%s4285_s1 + $0x18] sm:$0xff]   ;;  %v3273_v6 = vld [vmem:[%s4285_s1 + $0x20] sm:$0xff]   ;;  %v3274_v7 = vld [vmem:[%s4285_s1 + $0x28] sm:$0xff]   ;;  %s4230_s8 = scalar_lea.hbm %s4288_s4, %s2888_s14  ;;  %s3567_s11 = smov [#allocation6]  }
  0x3d   : > { %2961 = vmatprep.subr.bf16.mxu0 %v3268_v1  ;;  %v3275_v8 = vld [vmem:[%s4285_s1 + $0x30] sm:$0xff]   ;;  %v3276_v9 = vld [vmem:[%s4285_s1 + $0x38] sm:$0xff]   ;;  %v3277_v10 = vld [vmem:[%s4285_s1 + $0x40] sm:$0xff]   ;;  %s3483_s12 = sshll.u32 %s3567_s11, 4  ;;  %s3484_s12 = int_to_ptr.vmem [resolvable:$false] %s3483_s12 }
  0x3e   : > { %v3278_v11 = vld [vmem:[%s4285_s1 + $0x48] sm:$0xff]   ;;  %v3279_v12 = vld [vmem:[%s4285_s1 + $0x50] sm:$0xff]   ;;  %v3280_v13 = vld [vmem:[%s4285_s1 + $0x58] sm:$0xff]   ;;  %s3485_s21 = scalar_lea.vmem %s3484_s12, 10240 }
  0x3f   : > { %v3281_v14 = vld [vmem:[%s4285_s1 + $0x60] sm:$0xff]   ;;  %v3282_v15 = vld [vmem:[%s4285_s1 + $0x68] sm:$0xff]   ;;  %v3283_v16 = vld [vmem:[%s4285_s1 + $0x70] sm:$0xff]  }
  0x40   : > { %2962 = vmatpush3.bf16.msra.mxu0 %v3268_v1  ;;  %v3284_v17 = vld [vmem:[%s4285_s1 + $0x78] sm:$0xff]   ;;  %v3285_v18 = vld [vmem:[%s4285_s1 + $0x80] sm:$0xff]   ;;  %v3286_v19 = vld [vmem:[%s4285_s1 + $0x88] sm:$0xff]  }
  0x41   : > { %v3287_v20 = vld [vmem:[%s4285_s1 + $0x90] sm:$0xff]   ;;  %v3288_v21 = vld [vmem:[%s4285_s1 + $0x98] sm:$0xff]   ;;  %v3289_v22 = vld [vmem:[%s4285_s1 + $0xa0] sm:$0xff]   ;;  %1793 = vmatprep.subr.bf16.mxu0 %v3566_v27 }
  0x42   : > { %v3290_v23 = vld [vmem:[%s4285_s1 + $0xa8] sm:$0xff]   ;;  %v3291_v24 = vld [vmem:[%s4285_s1 + $0xb0] sm:$0xff]   ;;  %v3292_v25 = vld [vmem:[%s4285_s1 + $0xb8] sm:$0xff]  }
  0x43   : > { %2964 = vmatmul.mubr.msk.bf16.vlgmr.msra.gmra.mrb[0].mxu0 %vm599_vm0, %v3270_v3  ;;  %v3293_v26 = vld [vmem:[%s4285_s1 + $0xc0] sm:$0xff]   ;;  %v3294_v28 = vld [vmem:[%s4285_s1 + $0xc8] sm:$0xff]   ;;  %v3295_v29 = vld [vmem:[%s4285_s1 + $0xd0] sm:$0xff]  }
  0x44   : > { %2967 = vmatprep.mubr.msk.bf16.mxu0 %vm599_vm0, %v3271_v4  ;;  %v3296_v30 = vld [vmem:[%s4285_s1 + $0xd8] sm:$0xff]   ;;  %v3297_v31 = vld [vmem:[%s4285_s1 + $0xe0] sm:$0xff]   ;;  %v3298_v32 = vld [vmem:[%s4285_s1 + $0xe8] sm:$0xff]  }
  0x45   : > { %v3299_v33 = vld [vmem:[%s4285_s1 + $0xf0] sm:$0xff]   ;;  %v3300_v34 = vld [vmem:[%s4285_s1 + $0xf8] sm:$0xff]   ;;  %v3301_v35 = vld [vmem:[%s4285_s1 + $0x100] sm:$0xff]  }
  0x46   : > { %v3302_v36 = vld [vmem:[%s4285_s1 + $0x108] sm:$0xff]   ;;  %v3303_v37 = vld [vmem:[%s4285_s1 + $0x110] sm:$0xff]   ;;  %v3304_v38 = vld [vmem:[%s4285_s1 + $0x118] sm:$0xff]  }
  0x47   : > { %v3305_v39 = vld [vmem:[%s4285_s1 + $0x120] sm:$0xff]   ;;  %v3306_v40 = vld [vmem:[%s4285_s1 + $0x128] sm:$0xff]   ;;  %v3307_v41 = vld [vmem:[%s4285_s1 + $0x130] sm:$0xff]  }
  0x48   : > { %v3308_v42 = vld [vmem:[%s4285_s1 + $0x138] sm:$0xff]  }
  0x49   : > { %v3311_v43 = vld [vmem:[%s3709_s26 + $0x144] ss:$20 sps:$4 sm:$0xff]  }
  0x4a   : > { %1889 = vmatprep.mubr.bf16.mxu1 %v3311_v43  ;;  %v3325_v44 = vld [vmem:[%s3709_s26 + $0x4] ss:$20 sps:$4 sm:$0xff]   ;;  %v3332_v43 = vld [vmem:[%s3709_s26 + $0x28] ss:$20 sps:$4 sm:$0xff]  }
  0x4b   : > { %2968 = vmatmul.mubr.msk.bf16.gmra.mrb[4].mxu0 %vm599_vm0, %v3272_v5 }
  0x4c   : > { %2971 = vmatprep.mubr.msk.bf16.mxu0 %vm599_vm0, %v3273_v6 }
  0x53   : > { %2972 = vmatmul.mubr.msk.bf16.gmra.mrb[8].mxu0 %vm599_vm0, %v3274_v7 }
  0x54   : > { %2975 = vmatprep.mubr.msk.bf16.mxu0 %vm599_vm0, %v3275_v8 }
  0x5b   : > { %2976 = vmatmul.mubr.msk.bf16.gmra.mrb[12].mxu0 %vm599_vm0, %v3276_v9 }
  0x5c   : > { %2979 = vmatprep.mubr.msk.bf16.mxu0 %vm599_vm0, %v3277_v10 }
  0x63   : > { %2980 = vmatmul.mubr.msk.bf16.gmra.mrb[16].mxu0 %vm599_vm0, %v3278_v11 }
  0x64   : > { %2983 = vmatprep.mubr.msk.bf16.mxu0 %vm599_vm0, %v3279_v12 }
  0x6b   : > { %2984 = vmatmul.mubr.msk.bf16.gmra.mrb[20].mxu0 %vm599_vm0, %v3280_v13 }
  0x6c   : > { %2987 = vmatprep.mubr.msk.bf16.mxu0 %vm599_vm0, %v3281_v14 }
  0x73   : > { %2988 = vmatmul.mubr.msk.bf16.gmra.mrb[24].mxu0 %vm599_vm0, %v3282_v15 }
  0x74   : > { %2991 = vmatprep.mubr.msk.bf16.mxu0 %vm599_vm0, %v3283_v16 }
  0x7b   : > { %2992 = vmatmul.mubr.msk.bf16.gmra.mrb[28].mxu0 %vm599_vm0, %v3284_v17 }
  0x7c   : > { %2995 = vmatprep.mubr.msk.bf16.mxu0 %vm599_vm0, %v3285_v18 }
  0x83   : > { %2996 = vmatmul.mubr.msk.bf16.gmra.mrb[32].mxu0 %vm599_vm0, %v3286_v19 }
  0x84   : > { %2999 = vmatprep.mubr.msk.bf16.mxu0 %vm599_vm0, %v3287_v20 }
  0x8b   : > { %3000 = vmatmul.mubr.msk.bf16.gmra.mrb[36].mxu0 %vm599_vm0, %v3288_v21 }
  0x8c   : > { %3003 = vmatprep.mubr.msk.bf16.mxu0 %vm599_vm0, %v3289_v22 }
  0x93   : > { %3004 = vmatmul.mubr.msk.bf16.gmra.mrb[40].mxu0 %vm599_vm0, %v3290_v23 }
  0x94   : > { %3007 = vmatprep.mubr.msk.bf16.mxu0 %vm599_vm0, %v3291_v24 }
  0x9b   : > { %3008 = vmatmul.mubr.msk.bf16.gmra.mrb[44].mxu0 %vm599_vm0, %v3292_v25 }
  0x9c   : > { %3011 = vmatprep.mubr.msk.bf16.mxu0 %vm599_vm0, %v3293_v26 }
  0xa3   : > { %3012 = vmatmul.mubr.msk.bf16.gmra.mrb[48].mxu0 %vm599_vm0, %v3294_v28 }
  0xa4   : > { %3015 = vmatprep.mubr.msk.bf16.mxu0 %vm599_vm0, %v3295_v29 }
  0xab   : > { %3016 = vmatmul.mubr.msk.bf16.gmra.mrb[52].mxu0 %vm599_vm0, %v3296_v30 }
  0xac   : > { %3019 = vmatprep.mubr.msk.bf16.mxu0 %vm599_vm0, %v3297_v31 }
  0xb3   : > { %3020 = vmatmul.mubr.msk.bf16.gmra.mrb[56].mxu0 %vm599_vm0, %v3298_v32  ;;  %v3309_v32 = vld [vmem:[%s3709_s26 + $0x140] ss:$20 sps:$4 sm:$0xff]  }
  0xb4   : > { %3023 = vmatprep.mubr.msk.bf16.mxu0 %vm599_vm0, %v3299_v33  ;;  %v3323_v33 = vld [vmem:[%s3709_s26] ss:$20 sps:$4 sm:$0xff]  }
  0xbb   : > { %3024 = vmatmul.mubr.msk.bf16.gmra.mrb[60].mxu0 %vm599_vm0, %v3300_v34 }
  0xbc   : > { %3027 = vmatprep.mubr.msk.bf16.mxu0 %vm599_vm0, %v3301_v35  ;;  %v3312_v35 = vld [vmem:[%s3709_s26 + $0x16c] ss:$20 sps:$4 sm:$0xff]  }
  0xc3   : > { %3028 = vmatmul.mubr.msk.bf16.gmra.mrb[64].mxu0 %vm599_vm0, %v3302_v36 }
  0xc4   : > { %3031 = vmatprep.mubr.msk.bf16.mxu0 %vm599_vm0, %v3303_v37 }
  0xcb   : > { %3032 = vmatmul.mubr.msk.bf16.gmra.mrb[68].mxu0 %vm599_vm0, %v3304_v38  ;;  %v3329_v38 = vld [vmem:[%s3709_s26 + $0x2c] ss:$20 sps:$4 sm:$0xff]  }
  0xcc   : > { %3035 = vmatprep.mubr.msk.bf16.mxu0 %vm599_vm0, %v3305_v39 }
  0xd3   : > { %3036 = vmatmul.mubr.msk.bf16.gmra.mrb[72].mxu0 %vm599_vm0, %v3306_v40 }
  0xd4   : > { %3039 = vmatprep.mubr.msk.bf16.mxu0 %vm599_vm0, %v3307_v41 }
  0xdb   : > { %3040 = vmatmul.mubr.msk.bf16.gmra.mrb[76].mxu0 %vm599_vm0, %v3308_v42  ;;  %v3314_v42 = vld [vmem:[%s3709_s26 + $0x168] ss:$20 sps:$4 sm:$0xff]  }
  0xdc   : > { %1825 = vmatprep.mubr.bf16.mxu0 %v3325_v44 }
 0x116   : > { %v2965_v45 = vpop.f32.mrb[0].mxu0 }
 0x117   : > { %v754_v46 = vpop.f32.mrb[1].mxu0 }
 0x118   : > { %v2966_v47 = vpop.f32.mrb[2].mxu0 }
 0x119   : > { %v1074_v48 = vpack.c.bf16 %v2966_v47, %v2965_v45  ;;  %v757_v49 = vpop.f32.mrb[3].mxu0  ;;  %v3315_v45 = vld [vmem:[%s3709_s26 + $0x194] ss:$20 sps:$4 sm:$0xff]  }
 0x11a   : > { %v1073_v50 = vpack.c.bf16 %v757_v49, %v754_v46 }
 0x11c   : > { %1794 = vmatpush1.bf16.msra.mxu0 %v1073_v50  ;;  %3115 = vmatpush1.bf16.msra.mxu1 %v1073_v50 }
 0x11d   : > { %1795 = vmatprep.subr.bf16.mxu0 %v3566_v27  ;;  %3100 = vmatprep.subr.bf16.mxu1 %v3566_v27 }
 0x11e   : > { %v2969_v51 = vpop.f32.mrb[4].mxu0 }
 0x11f   : > { %v770_v52 = vpop.f32.mrb[5].mxu0 }
 0x120   : > { %v2970_v53 = vpop.f32.mrb[6].mxu0  ;;  %1796 = vmatpush1.bf16.msra.mxu0 %v1074_v48  ;;  %3116 = vmatpush1.bf16.msra.mxu1 %v1074_v48  ;;  %v3335_v48 = vld [vmem:[%s3709_s26 + $0x54] ss:$20 sps:$4 sm:$0xff]  }
 0x121   : > { %v1076_v54 = vpack.c.bf16 %v2970_v53, %v2969_v51  ;;  %v773_v55 = vpop.f32.mrb[7].mxu0  ;;  %1797 = vmatprep.subr.bf16.mxu0 %v3566_v27  ;;  %3101 = vmatprep.subr.bf16.mxu1 %v3566_v27  ;;  %v3338_v53 = vld [vmem:[%s3709_s26 + $0x50] ss:$20 sps:$4 sm:$0xff]  }
 0x122   : > { %v1075_v56 = vpack.c.bf16 %v773_v55, %v770_v52  ;;  %v3317_v52 = vld [vmem:[%s3709_s26 + $0x190] ss:$20 sps:$4 sm:$0xff]  }
 0x123   : > { %v3318_v55 = vld [vmem:[%s3709_s26 + $0x1bc] ss:$20 sps:$4 sm:$0xff]  }
 0x124   : > { %1798 = vmatpush1.bf16.msra.mxu0 %v1075_v56  ;;  %3117 = vmatpush1.bf16.msra.mxu1 %v1075_v56 }
 0x125   : > { %1799 = vmatprep.subr.bf16.mxu0 %v3566_v27  ;;  %3102 = vmatprep.subr.bf16.mxu1 %v3566_v27 }
 0x126   : > { %v2973_v57 = vpop.f32.mrb[8].mxu0 }
 0x127   : > { %v786_v58 = vpop.f32.mrb[9].mxu0 }
 0x128   : > { %v2974_v59 = vpop.f32.mrb[10].mxu0  ;;  %1800 = vmatpush1.bf16.msra.mxu0 %v1076_v54  ;;  %3118 = vmatpush1.bf16.msra.mxu1 %v1076_v54 }
 0x129   : > { %v1078_v60 = vpack.c.bf16 %v2974_v59, %v2973_v57  ;;  %v789_v61 = vpop.f32.mrb[11].mxu0  ;;  %1801 = vmatprep.subr.bf16.mxu0 %v3566_v27  ;;  %3103 = vmatprep.subr.bf16.mxu1 %v3566_v27 }
 0x12a   : > { %v1077_v62 = vpack.c.bf16 %v789_v61, %v786_v58  ;;  %v3341_v58 = vld [vmem:[%s3709_s26 + $0x7c] ss:$20 sps:$4 sm:$0xff]   ;;  %v3320_v61 = vld [vmem:[%s3709_s26 + $0x1b8] ss:$20 sps:$4 sm:$0xff]  }
 0x12c   : > { %1802 = vmatpush1.bf16.msra.mxu0 %v1077_v62  ;;  %3119 = vmatpush1.bf16.msra.mxu1 %v1077_v62 }
 0x12d   : > { %1803 = vmatprep.subr.bf16.mxu0 %v3566_v27  ;;  %3104 = vmatprep.subr.bf16.mxu1 %v3566_v27 }
 0x12e   : > { %v2977_v63 = vpop.f32.mrb[12].mxu0 }
 0x12f   : > { %v802_v0 = vpop.f32.mrb[13].mxu0 }
 0x130   : > { %v2978_v1 = vpop.f32.mrb[14].mxu0  ;;  %1804 = vmatpush1.bf16.msra.mxu0 %v1078_v60  ;;  %3120 = vmatpush1.bf16.msra.mxu1 %v1078_v60 }
 0x131   : > { %v1080_v2 = vpack.c.bf16 %v2978_v1, %v2977_v63  ;;  %v805_v3 = vpop.f32.mrb[15].mxu0  ;;  %1805 = vmatprep.subr.bf16.mxu0 %v3566_v27  ;;  %3105 = vmatprep.subr.bf16.mxu1 %v3566_v27  ;;  %v3344_v63 = vld [vmem:[%s3709_s26 + $0x78] ss:$20 sps:$4 sm:$0xff]  }
 0x132   : > { %v1079_v4 = vpack.c.bf16 %v805_v3, %v802_v0  ;;  %v3321_v1 = vld [vmem:[%s3709_s26 + $0x1e4] ss:$20 sps:$4 sm:$0xff]  }
 0x134   : > { %1806 = vmatpush1.bf16.msra.mxu0 %v1079_v4  ;;  %3121 = vmatpush1.bf16.msra.mxu1 %v1079_v4  ;;  %v3347_v4 = vld [vmem:[%s3709_s26 + $0xa4] ss:$20 sps:$4 sm:$0xff]  }
 0x135   : > { %1807 = vmatprep.subr.bf16.mxu0 %v3566_v27  ;;  %3106 = vmatprep.subr.bf16.mxu1 %v3566_v27 }
 0x136   : > { %v2981_v5 = vpop.f32.mrb[16].mxu0 }
 0x137   : > { %v818_v6 = vpop.f32.mrb[17].mxu0 }
 0x138   : > { %v2982_v7 = vpop.f32.mrb[18].mxu0  ;;  %1808 = vmatpush1.bf16.msra.mxu0 %v1080_v2  ;;  %3122 = vmatpush1.bf16.msra.mxu1 %v1080_v2 }
 0x139   : > { %v1082_v8 = vpack.c.bf16 %v2982_v7, %v2981_v5  ;;  %v821_v9 = vpop.f32.mrb[19].mxu0  ;;  %1809 = vmatprep.subr.bf16.mxu0 %v3566_v27  ;;  %3107 = vmatprep.subr.bf16.mxu1 %v3566_v27  ;;  %v3326_v7 = vld [vmem:[%s3709_s26 + $0x1e0] ss:$20 sps:$4 sm:$0xff]  }
 0x13a   : > { %v1081_v10 = vpack.c.bf16 %v821_v9, %v818_v6  ;;  %v3350_v9 = vld [vmem:[%s3709_s26 + $0xa0] ss:$20 sps:$4 sm:$0xff]  }
 0x13c   : > { %1810 = vmatpush1.bf16.msra.mxu0 %v1081_v10  ;;  %3123 = vmatpush1.bf16.msra.mxu1 %v1081_v10 }
 0x13d   : > { %1811 = vmatprep.subr.bf16.mxu0 %v3566_v27  ;;  %3108 = vmatprep.subr.bf16.mxu1 %v3566_v27 }
 0x13e   : > { %v2985_v11 = vpop.f32.mrb[20].mxu0 }
 0x13f   : > { %v834_v12 = vpop.f32.mrb[21].mxu0 }
 0x140   : > { %v2986_v13 = vpop.f32.mrb[22].mxu0  ;;  %1812 = vmatpush1.bf16.msra.mxu0 %v1082_v8  ;;  %3124 = vmatpush1.bf16.msra.mxu1 %v1082_v8 }
 0x141   : > { %v1084_v14 = vpack.c.bf16 %v2986_v13, %v2985_v11  ;;  %v837_v15 = vpop.f32.mrb[23].mxu0  ;;  %1813 = vmatprep.subr.bf16.mxu0 %v3566_v27  ;;  %3109 = vmatprep.subr.bf16.mxu1 %v3566_v27  ;;  %v3327_v11 = vld [vmem:[%s3709_s26 + $0x20c] ss:$20 sps:$4 sm:$0xff]  }
 0x142   : > { %v1083_v16 = vpack.c.bf16 %v837_v15, %v834_v12 }
 0x144   : > { %1814 = vmatpush1.bf16.msra.mxu0 %v1083_v16  ;;  %3125 = vmatpush1.bf16.msra.mxu1 %v1083_v16 }
 0x145   : > { %1815 = vmatprep.subr.bf16.mxu0 %v3566_v27  ;;  %3110 = vmatprep.subr.bf16.mxu1 %v3566_v27 }
 0x146   : > { %v2989_v17 = vpop.f32.mrb[24].mxu0 }
 0x147   : > { %v850_v18 = vpop.f32.mrb[25].mxu0 }
 0x148   : > { %v2990_v19 = vpop.f32.mrb[26].mxu0  ;;  %1816 = vmatpush1.bf16.msra.mxu0 %v1084_v14  ;;  %3126 = vmatpush1.bf16.msra.mxu1 %v1084_v14  ;;  %v3353_v14 = vld [vmem:[%s3709_s26 + $0xcc] ss:$20 sps:$4 sm:$0xff]  }
 0x149   : > { %v1086_v20 = vpack.c.bf16 %v2990_v19, %v2989_v17  ;;  %v853_v21 = vpop.f32.mrb[27].mxu0  ;;  %1817 = vmatprep.subr.bf16.mxu0 %v3566_v27  ;;  %3111 = vmatprep.subr.bf16.mxu1 %v3566_v27  ;;  %v3331_v17 = vld [vmem:[%s3709_s26 + $0x208] ss:$20 sps:$4 sm:$0xff]  }
 0x14a   : > { %v1085_v22 = vpack.c.bf16 %v853_v21, %v850_v18  ;;  %v3356_v19 = vld [vmem:[%s3709_s26 + $0xc8] ss:$20 sps:$4 sm:$0xff]  }
 0x14c   : > { %1818 = vmatpush1.bf16.msra.mxu0 %v1085_v22  ;;  %3127 = vmatpush1.bf16.msra.mxu1 %v1085_v22 }
 0x14d   : > { %1819 = vmatprep.subr.bf16.mxu0 %v3566_v27  ;;  %3112 = vmatprep.subr.bf16.mxu1 %v3566_v27 }
 0x14e   : > { %v2993_v23 = vpop.f32.mrb[28].mxu0 }
 0x14f   : > { %v866_v24 = vpop.f32.mrb[29].mxu0 }
 0x150   : > { %v2994_v25 = vpop.f32.mrb[30].mxu0  ;;  %1820 = vmatpush1.bf16.msra.mxu0 %v1086_v20  ;;  %3128 = vmatpush1.bf16.msra.mxu1 %v1086_v20  ;;  %v3333_v20 = vld [vmem:[%s3709_s26 + $0x234] ss:$20 sps:$4 sm:$0xff]  }
 0x151   : > { %v1088_v26 = vpack.c.bf16 %v2994_v25, %v2993_v23  ;;  %v869_v28 = vpop.f32.mrb[31].mxu0  ;;  %1821 = vmatprep.subr.bf16.mxu0 %v3566_v27  ;;  %3113 = vmatprep.subr.bf16.mxu1 %v3566_v27 }
 0x152   : > { %v1087_v29 = vpack.c.bf16 %v869_v28, %v866_v24  ;;  %v3359_v24 = vld [vmem:[%s3709_s26 + $0xf4] ss:$20 sps:$4 sm:$0xff]   ;;  %v3337_v28 = vld [vmem:[%s3709_s26 + $0x230] ss:$20 sps:$4 sm:$0xff]  }
 0x154   : > { %1822 = vmatpush1.bf16.msra.mxu0 %v1087_v29  ;;  %3129 = vmatpush1.bf16.msra.mxu1 %v1087_v29 }
 0x155   : > { %1823 = vmatprep.subr.bf16.mxu0 %v3566_v27  ;;  %3114 = vmatprep.subr.bf16.mxu1 %v3566_v27 }
 0x156   : > { %v2997_v30 = vpop.f32.mrb[32].mxu0 }
 0x157   : > { %v882_v31 = vpop.f32.mrb[33].mxu0 }
 0x158   : > { %v2998_v34 = vpop.f32.mrb[34].mxu0  ;;  %1824 = vmatpush1.bf16.msra.mxu0 %v1088_v26  ;;  %3130 = vmatpush1.bf16.msra.mxu1 %v1088_v26 }
 0x159   : > { %v1090_v36 = vpack.c.bf16 %v2998_v34, %v2997_v30  ;;  %v885_v37 = vpop.f32.mrb[35].mxu0  ;;  %1986 = vmatprep.subr.bf16.mxu1 %v3566_v27  ;;  %v3362_v30 = vld [vmem:[%s3709_s26 + $0xf0] ss:$20 sps:$4 sm:$0xff]  }
 0x15a   : > { %v1089_v39 = vpack.c.bf16 %v885_v37, %v882_v31 }
 0x15b   : > { %1890 = vmatmul.mubr.bf16.vlgmr.msra.gmra.mrb[0].mxu1 %v3309_v32  ;;  %1826 = vmatmul.mubr.bf16.vlgmr.msra.gmra.mrb[80].mxu0 %v3323_v33  ;;  %v3339_v32 = vld [vmem:[%s3709_s26 + $0x25c] ss:$20 sps:$4 sm:$0xff]  }
 0x15c   : > { %1987 = vmatpush1.bf16.msra.mxu1 %v1089_v39  ;;  %1897 = vmatprep.mubr.bf16.mxu1 %v3312_v35  ;;  %v3365_v35 = vld [vmem:[%s3709_s26 + $0x11c] ss:$20 sps:$4 sm:$0xff]   ;;  %v3343_v39 = vld [vmem:[%s3709_s26 + $0x258] ss:$20 sps:$4 sm:$0xff]  }
 0x15d   : > { %1988 = vmatprep.subr.bf16.mxu1 %v3566_v27  ;;  %1833 = vmatprep.mubr.bf16.mxu0 %v3329_v38 }
 0x15e   : > { %v3001_v40 = vpop.f32.mrb[36].mxu0 }
 0x15f   : > { %v898_v41 = vpop.f32.mrb[37].mxu0 }
 0x160   : > { %v3002_v44 = vpop.f32.mrb[38].mxu0  ;;  %1989 = vmatpush1.bf16.msra.mxu1 %v1090_v36 }
 0x161   : > { %v1092_v46 = vpack.c.bf16 %v3002_v44, %v3001_v40  ;;  %v901_v47 = vpop.f32.mrb[39].mxu0  ;;  %1990 = vmatprep.subr.bf16.mxu1 %v3566_v27  ;;  %v3368_v40 = vld [vmem:[%s3709_s26 + $0x118] ss:$20 sps:$4 sm:$0xff]  }
 0x162   : > { %v1091_v49 = vpack.c.bf16 %v901_v47, %v898_v41 }
 0x163   : > { %1898 = vmatmul.mubr.bf16.gmra.mrb[4].mxu1 %v3314_v42  ;;  %1834 = vmatmul.mubr.bf16.gmra.mrb[84].mxu0 %v3332_v43  ;;  %v3345_v42 = vld [vmem:[%s3709_s26 + $0x284] ss:$20 sps:$4 sm:$0xff]  }
 0x164   : > { %1991 = vmatpush1.bf16.msra.mxu1 %v1091_v49  ;;  %1905 = vmatprep.mubr.bf16.mxu1 %v3315_v45  ;;  %v3372_v45 = vld [vmem:[%s3709_s26 + $0x10] ss:$20 sps:$4 sm:$0xff]   ;;  %v3349_v49 = vld [vmem:[%s3709_s26 + $0x280] ss:$20 sps:$4 sm:$0xff]  }
 0x165   : > { %1992 = vmatprep.subr.bf16.mxu1 %v3566_v27  ;;  %1841 = vmatprep.mubr.bf16.mxu0 %v3335_v48 }
 0x166   : > { %v3005_v50 = vpop.f32.mrb[40].mxu0 }
 0x167   : > { %v914_v51 = vpop.f32.mrb[41].mxu0 }
 0x168   : > { %1993 = vmatpush1.bf16.msra.mxu1 %v1092_v46  ;;  %v3006_v54 = vpop.f32.mrb[42].mxu0 }
 0x169   : > { %v1094_v56 = vpack.c.bf16 %v3006_v54, %v3005_v50  ;;  %v917_v57 = vpop.f32.mrb[43].mxu0  ;;  %1994 = vmatprep.subr.bf16.mxu1 %v3566_v27 }
 0x16a   : > { %v1093_v59 = vpack.c.bf16 %v917_v57, %v914_v51  ;;  %v3351_v51 = vld [vmem:[%s3709_s26 + $0x2ac] ss:$20 sps:$4 sm:$0xff]  }
 0x16b   : > { %1906 = vmatmul.mubr.bf16.gmra.mrb[8].mxu1 %v3317_v52  ;;  %1842 = vmatmul.mubr.bf16.gmra.mrb[88].mxu0 %v3338_v53 }
 0x16c   : > { %1995 = vmatpush1.bf16.msra.mxu1 %v1093_v59  ;;  %1913 = vmatprep.mubr.bf16.mxu1 %v3318_v55 }
 0x16d   : > { %1996 = vmatprep.subr.bf16.mxu1 %v3566_v27  ;;  %1849 = vmatprep.mubr.bf16.mxu0 %v3341_v58  ;;  %v3357_v58 = vld [vmem:[%s3709_s26 + $0x2d4] ss:$20 sps:$4 sm:$0xff]  }
 0x16e   : > { %v3009_v60 = vpop.f32.mrb[44].mxu0 }
 0x16f   : > { %v930_v62 = vpop.f32.mrb[45].mxu0 }
 0x170   : > { %1997 = vmatpush1.bf16.msra.mxu1 %v1094_v56  ;;  %v3010_v0 = vpop.f32.mrb[46].mxu0  ;;  %v3355_v56 = vld [vmem:[%s3709_s26 + $0x2a8] ss:$20 sps:$4 sm:$0xff]  }
 0x171   : > { %v1096_v2 = vpack.c.bf16 %v3010_v0, %v3009_v60  ;;  %v933_v3 = vpop.f32.mrb[47].mxu0  ;;  %1998 = vmatprep.subr.bf16.mxu1 %v3566_v27  ;;  %v3361_v0 = vld [vmem:[%s3709_s26 + $0x2d0] ss:$20 sps:$4 sm:$0xff]  }
 0x172   : > { %v1095_v5 = vpack.c.bf16 %v933_v3, %v930_v62 }
 0x173   : > { %1914 = vmatmul.mubr.bf16.gmra.mrb[12].mxu1 %v3320_v61  ;;  %1850 = vmatmul.mubr.bf16.gmra.mrb[92].mxu0 %v3344_v63 }
 0x174   : > { %1999 = vmatpush1.bf16.msra.mxu1 %v1095_v5  ;;  %1921 = vmatprep.mubr.bf16.mxu1 %v3321_v1 }
 0x175   : > { %2000 = vmatprep.subr.bf16.mxu1 %v3566_v27  ;;  %1857 = vmatprep.mubr.bf16.mxu0 %v3347_v4 }
 0x176   : > { %v3013_v6 = vpop.f32.mrb[48].mxu0 }
 0x177   : > { %v946_v8 = vpop.f32.mrb[49].mxu0 }
 0x178   : > { %2001 = vmatpush1.bf16.msra.mxu1 %v1096_v2  ;;  %v3014_v10 = vpop.f32.mrb[50].mxu0  ;;  %v3363_v2 = vld [vmem:[%s3709_s26 + $0x2fc] ss:$20 sps:$4 sm:$0xff]  }
 0x179   : > { %v1098_v12 = vpack.c.bf16 %v3014_v10, %v3013_v6  ;;  %v949_v13 = vpop.f32.mrb[51].mxu0  ;;  %2002 = vmatprep.subr.bf16.mxu1 %v3566_v27  ;;  %v3371_v10 = vld [vmem:[%s3709_s26 + $0xc] ss:$20 sps:$4 sm:$0xff]  }
 0x17a   : > { %v1097_v15 = vpack.c.bf16 %v949_v13, %v946_v8  ;;  %v3367_v8 = vld [vmem:[%s3709_s26 + $0x2f8] ss:$20 sps:$4 sm:$0xff]  }
 0x17b   : > { %1922 = vmatmul.mubr.bf16.gmra.mrb[16].mxu1 %v3326_v7  ;;  %1858 = vmatmul.mubr.bf16.gmra.mrb[96].mxu0 %v3350_v9 }
 0x17c   : > { %1929 = vmatprep.mubr.bf16.mxu1 %v3327_v11  ;;  %2003 = vmatpush1.bf16.msra.mxu1 %v1097_v15  ;;  %v3373_v15 = vld [vmem:[%s3709_s26 + $0x38] ss:$20 sps:$4 sm:$0xff]  }
 0x17d   : > { %2004 = vmatprep.subr.bf16.mxu1 %v3566_v27  ;;  %1865 = vmatprep.mubr.bf16.mxu0 %v3353_v14  ;;  %v3369_v14 = vld [vmem:[%s3709_s26 + $0x8] ss:$20 sps:$4 sm:$0xff]  }
 0x17e   : > { %v3017_v16 = vpop.f32.mrb[52].mxu0 }
 0x17f   : > { %v962_v18 = vpop.f32.mrb[53].mxu0 }
 0x180   : > { %2005 = vmatpush1.bf16.msra.mxu1 %v1098_v12  ;;  %v3018_v21 = vpop.f32.mrb[54].mxu0 }
 0x181   : > { %v1100_v22 = vpack.c.bf16 %v3018_v21, %v3017_v16  ;;  %v965_v23 = vpop.f32.mrb[55].mxu0  ;;  %2006 = vmatprep.subr.bf16.mxu1 %v3566_v27  ;;  %v3374_v16 = vld [vmem:[%s3709_s26 + $0x34] ss:$20 sps:$4 sm:$0xff]   ;;  %v3388_v21 = vld [vmem:[%s3709_s26 + $0xb0] ss:$20 sps:$4 sm:$0xff]  }
 0x182   : > { %v1099_v25 = vpack.c.bf16 %v965_v23, %v962_v18  ;;  %v3376_v18 = vld [vmem:[%s3709_s26 + $0x30] ss:$20 sps:$4 sm:$0xff]  }
 0x183   : > { %1930 = vmatmul.mubr.bf16.gmra.mrb[20].mxu1 %v3331_v17  ;;  %1866 = vmatmul.mubr.bf16.gmra.mrb[100].mxu0 %v3356_v19  ;;  %v3380_v17 = vld [vmem:[%s3709_s26 + $0x60] ss:$20 sps:$4 sm:$0xff]   ;;  %v3377_v19 = vld [vmem:[%s3709_s26 + $0x5c] ss:$20 sps:$4 sm:$0xff]   ;;  %v3382_v23 = vld [vmem:[%s3709_s26 + $0x84] ss:$20 sps:$4 sm:$0xff]  }
 0x184   : > { %1937 = vmatprep.mubr.bf16.mxu1 %v3333_v20  ;;  %2007 = vmatpush1.bf16.msra.mxu1 %v1099_v25  ;;  %v3381_v20 = vld [vmem:[%s3709_s26 + $0x88] ss:$20 sps:$4 sm:$0xff]   ;;  %v3396_v25 = vld [vmem:[%s3709_s26 + $0x100] ss:$20 sps:$4 sm:$0xff]  }
 0x185   : > { %2008 = vmatprep.subr.bf16.mxu1 %v3566_v27  ;;  %1873 = vmatprep.mubr.bf16.mxu0 %v3359_v24  ;;  %v3389_v24 = vld [vmem:[%s3709_s26 + $0xd8] ss:$20 sps:$4 sm:$0xff]  }
 0x186   : > { %v3021_v26 = vpop.f32.mrb[56].mxu0 }
 0x187   : > { %v978_v29 = vpop.f32.mrb[57].mxu0 }
 0x188   : > { %v3022_v31 = vpop.f32.mrb[58].mxu0  ;;  %2009 = vmatpush1.bf16.msra.mxu1 %v1100_v22  ;;  %v3379_v22 = vld [vmem:[%s3709_s26 + $0x58] ss:$20 sps:$4 sm:$0xff]  }
 0x189   : > { %v1102_v33 = vpack.c.bf16 %v3022_v31, %v3021_v26  ;;  %v981_v34 = vpop.f32.mrb[59].mxu0  ;;  %2010 = vmatprep.subr.bf16.mxu1 %v3566_v27  ;;  %v3384_v26 = vld [vmem:[%s3709_s26 + $0x80] ss:$20 sps:$4 sm:$0xff]   ;;  %v3387_v31 = vld [vmem:[%s3709_s26 + $0xa8] ss:$20 sps:$4 sm:$0xff]  }
 0x18a   : > { %v1101_v36 = vpack.c.bf16 %v981_v34, %v978_v29  ;;  %v3397_v29 = vld [vmem:[%s3709_s26 + $0x128] ss:$20 sps:$4 sm:$0xff]   ;;  %v3409_v34 = vld [vmem:[%s3709_s26 + $0x1a0] ss:$20 sps:$4 sm:$0xff]  }
 0x18b   : > { %1938 = vmatmul.mubr.bf16.gmra.mrb[24].mxu1 %v3337_v28  ;;  %1874 = vmatmul.mubr.bf16.gmra.mrb[104].mxu0 %v3362_v30  ;;  %v3385_v28 = vld [vmem:[%s3709_s26 + $0xac] ss:$20 sps:$4 sm:$0xff]   ;;  %v3401_v30 = vld [vmem:[%s3709_s26 + $0x150] ss:$20 sps:$4 sm:$0xff]  }
 0x18c   : > { %1945 = vmatprep.mubr.bf16.mxu1 %v3339_v32  ;;  %2011 = vmatpush1.bf16.msra.mxu1 %v1101_v36  ;;  %v3390_v32 = vld [vmem:[%s3709_s26 + $0xd4] ss:$20 sps:$4 sm:$0xff]   ;;  %v3393_v36 = vld [vmem:[%s3709_s26 + $0xfc] ss:$20 sps:$4 sm:$0xff]  }
 0x18d   : > { %2012 = vmatprep.subr.bf16.mxu1 %v3566_v27  ;;  %1881 = vmatprep.mubr.bf16.mxu0 %v3365_v35  ;;  %v3392_v35 = vld [vmem:[%s3709_s26 + $0xd0] ss:$20 sps:$4 sm:$0xff]  }
 0x18e   : > { %v3025_v37 = vpop.f32.mrb[60].mxu0 }
 0x18f   : > { %v994_v38 = vpop.f32.mrb[61].mxu0 }
 0x190   : > { %v3026_v41 = vpop.f32.mrb[62].mxu0  ;;  %2013 = vmatpush1.bf16.msra.mxu1 %v1102_v33  ;;  %v3404_v33 = vld [vmem:[%s3709_s26 + $0x178] ss:$20 sps:$4 sm:$0xff]  }
 0x191   : > { %v1104_v43 = vpack.c.bf16 %v3026_v41, %v3025_v37  ;;  %v997_v44 = vpop.f32.mrb[63].mxu0  ;;  %2014 = vmatprep.subr.bf16.mxu1 %v3566_v27  ;;  %v3412_v37 = vld [vmem:[%s3709_s26 + $0x1c8] ss:$20 sps:$4 sm:$0xff]   ;;  %v3420_v41 = vld [vmem:[%s3709_s26 + $0x218] ss:$20 sps:$4 sm:$0xff]  }
 0x192   : > { %v1103_v46 = vpack.c.bf16 %v997_v44, %v994_v38  ;;  %v3417_v38 = vld [vmem:[%s3709_s26 + $0x1f0] ss:$20 sps:$4 sm:$0xff]   ;;  %v3402_v44 = vld [vmem:[%s3709_s26 + $0x14c] ss:$20 sps:$4 sm:$0xff]  }
 0x193   : > { %1946 = vmatmul.mubr.bf16.gmra.mrb[28].mxu1 %v3343_v39  ;;  %1882 = vmatmul.mubr.bf16.gmra.mrb[108].mxu0 %v3368_v40  ;;  %v3395_v39 = vld [vmem:[%s3709_s26 + $0xf8] ss:$20 sps:$4 sm:$0xff]  }
 0x194   : > { %1953 = vmatprep.mubr.bf16.mxu1 %v3345_v42  ;;  %2015 = vmatpush1.bf16.msra.mxu1 %v1103_v46  ;;  %v3398_v40 = vld [vmem:[%s3709_s26 + $0x124] ss:$20 sps:$4 sm:$0xff]   ;;  %v3425_v42 = vld [vmem:[%s3709_s26 + $0x240] ss:$20 sps:$4 sm:$0xff]  }
 0x195   : > { %2016 = vmatprep.subr.bf16.mxu1 %v3566_v27  ;;  %3059 = vmatprep.mubr.bf16.mxu0 %v3372_v45  ;;  %v3428_v45 = vld [vmem:[%s3709_s26 + $0x268] ss:$20 sps:$4 sm:$0xff]   ;;  %v3433_v46 = vld [vmem:[%s3709_s26 + $0x290] ss:$20 sps:$4 sm:$0xff]  }
 0x196   : > { %v3029_v47 = vpop.f32.mrb[64].mxu0 }
 0x197   : > { %v1010_v48 = vpop.f32.mrb[65].mxu0 }
 0x198   : > { %v3030_v50 = vpop.f32.mrb[66].mxu0  ;;  %2017 = vmatpush1.bf16.msra.mxu1 %v1104_v43  ;;  %v3400_v43 = vld [vmem:[%s3709_s26 + $0x120] ss:$20 sps:$4 sm:$0xff]  }
 0x199   : > { %v1106_v52 = vpack.c.bf16 %v3030_v50, %v3029_v47  ;;  %v1013_v53 = vpop.f32.mrb[67].mxu0  ;;  %v3405_v47 = vld [vmem:[%s3709_s26 + $0x148] ss:$20 sps:$4 sm:$0xff]   ;;  %v3441_v50 = vld [vmem:[%s3709_s26 + $0x2e0] ss:$20 sps:$4 sm:$0xff]  }
 0x19a   : > { %v1105_v54 = vpack.c.bf16 %v1013_v53, %v1010_v48  ;;  %v3406_v48 = vld [vmem:[%s3709_s26 + $0x174] ss:$20 sps:$4 sm:$0xff]  }
 0x19b   : > { %1954 = vmatmul.mubr.bf16.gmra.mrb[32].mxu1 %v3349_v49  ;;  %v3436_v49 = vld [vmem:[%s3709_s26 + $0x2b8] ss:$20 sps:$4 sm:$0xff]   ;;  %v3444_v53 = vld [vmem:[%s3709_s26 + $0x308] ss:$20 sps:$4 sm:$0xff]  }
 0x19c   : > { %3043 = vmatprep.subr.bf16.mxu0 %v1105_v54  ;;  %1961 = vmatprep.mubr.bf16.mxu1 %v3351_v51  ;;  %v3408_v51 = vld [vmem:[%s3709_s26 + $0x170] ss:$20 sps:$4 sm:$0xff]  }
 0x19d   : > { %3044 = vmatpush3.bf16.msra.mxu0 %v1105_v54  ;;  %v3413_v54 = vld [vmem:[%s3709_s26 + $0x198] ss:$20 sps:$4 sm:$0xff]  }
 0x19e   : > { %v3033_v55 = vpop.f32.mrb[68].mxu0  ;;  %3045 = vmatprep.subr.bf16.mxu0 %v1106_v52 }
 0x19f   : > { %v1026_v27 = vpop.f32.mrb[69].mxu0 }
 0x1a0   : > { %v3034_v57 = vpop.f32.mrb[70].mxu0 }
 0x1a1   : > { %v1108_v59 = vpack.c.bf16 %v3034_v57, %v3033_v55  ;;  %v1029_v60 = vpop.f32.mrb[71].mxu0  ;;  %3046 = vmatpush3.bf16.msra.mxu0 %v1106_v52  ;;  %v3410_v52 = vld [vmem:[%s3709_s26 + $0x19c] ss:$20 sps:$4 sm:$0xff]   ;;  %v3414_v55 = vld [vmem:[%s3709_s26 + $0x1c4] ss:$20 sps:$4 sm:$0xff]  }
 0x1a2   : > { %v1107_v61 = vpack.c.bf16 %v1029_v60, %v1026_v27  ;;  %v3416_v27 = vld [vmem:[%s3709_s26 + $0x1c0] ss:$20 sps:$4 sm:$0xff]   ;;  %v3421_v57 = vld [vmem:[%s3709_s26 + $0x1e8] ss:$20 sps:$4 sm:$0xff]  }
 0x1a3   : > { %1962 = vmatmul.mubr.bf16.gmra.mrb[36].mxu1 %v3355_v56  ;;  %v3418_v56 = vld [vmem:[%s3709_s26 + $0x1ec] ss:$20 sps:$4 sm:$0xff]   ;;  %v3426_v60 = vld [vmem:[%s3709_s26 + $0x23c] ss:$20 sps:$4 sm:$0xff]  }
 0x1a4   : > { %3047 = vmatprep.subr.bf16.mxu0 %v1107_v61  ;;  %1969 = vmatprep.mubr.bf16.mxu1 %v3357_v58  ;;  %v3422_v58 = vld [vmem:[%s3709_s26 + $0x214] ss:$20 sps:$4 sm:$0xff]  }
 0x1a5   : > { %3048 = vmatpush3.bf16.msra.mxu0 %v1107_v61  ;;  %v3429_v61 = vld [vmem:[%s3709_s26 + $0x238] ss:$20 sps:$4 sm:$0xff]  }
 0x1a6   : > { %v3037_v62 = vpop.f32.mrb[72].mxu0  ;;  %3049 = vmatprep.subr.bf16.mxu0 %v1108_v59 }
 0x1a7   : > { %v1042_v63 = vpop.f32.mrb[73].mxu0 }
 0x1a8   : > { %v3038_v1 = vpop.f32.mrb[74].mxu0 }
 0x1a9   : > { %v1110_v3 = vpack.c.bf16 %v3038_v1, %v3037_v62  ;;  %v1045_v4 = vpop.f32.mrb[75].mxu0  ;;  %3050 = vmatpush3.bf16.msra.mxu0 %v1108_v59  ;;  %v3424_v59 = vld [vmem:[%s3709_s26 + $0x210] ss:$20 sps:$4 sm:$0xff]  }
 0x1aa   : > { %v1109_v5 = vpack.c.bf16 %v1045_v4, %v1042_v63  ;;  %v3430_v62 = vld [vmem:[%s3709_s26 + $0x264] ss:$20 sps:$4 sm:$0xff]  }
 0x1ab   : > { %1970 = vmatmul.mubr.bf16.gmra.mrb[40].mxu1 %v3361_v0  ;;  %v3432_v0 = vld [vmem:[%s3709_s26 + $0x260] ss:$20 sps:$4 sm:$0xff]  }
 0x1ac   : > { %3051 = vmatprep.subr.bf16.mxu0 %v1109_v5  ;;  %1977 = vmatprep.mubr.bf16.mxu1 %v3363_v2  ;;  %v3434_v2 = vld [vmem:[%s3709_s26 + $0x28c] ss:$20 sps:$4 sm:$0xff]  }
 0x1ad   : > { %3052 = vmatpush3.bf16.msra.mxu0 %v1109_v5 }
 0x1ae   : > { %v3041_v6 = vpop.f32.mrb[76].mxu0  ;;  %3053 = vmatprep.subr.bf16.mxu0 %v1110_v3 }
 0x1af   : > { %v1058_v7 = vpop.f32.mrb[77].mxu0 }
 0x1b0   : > { %v3042_v9 = vpop.f32.mrb[78].mxu0 }
 0x1b1   : > { %v1112_v11 = vpack.c.bf16 %v3042_v9, %v3041_v6  ;;  %v1061_v12 = vpop.f32.mrb[79].mxu0  ;;  %3054 = vmatpush3.bf16.msra.mxu0 %v1110_v3  ;;  %v3437_v6 = vld [vmem:[%s3709_s26 + $0x288] ss:$20 sps:$4 sm:$0xff]  }
 0x1b2   : > { %v1111_v13 = vpack.c.bf16 %v1061_v12, %v1058_v7  ;;  %v3440_v12 = vld [vmem:[%s3709_s26 + $0x2b0] ss:$20 sps:$4 sm:$0xff]  }
 0x1b3   : > { %1978 = vmatmul.mubr.bf16.gmra.mrb[44].mxu1 %v3367_v8  ;;  %v3438_v8 = vld [vmem:[%s3709_s26 + $0x2b4] ss:$20 sps:$4 sm:$0xff]  }
 0x1b4   : > { %3055 = vmatprep.subr.bf16.mxu0 %v1111_v13  ;;  %2018 = vmatprep.mubr.bf16.mxu1 %v3371_v10 }
 0x1b5   : > { %3056 = vmatpush3.bf16.msra.mxu0 %v1111_v13 }
 0x1b6   : > { %3057 = vmatprep.subr.bf16.mxu0 %v1112_v11 }
 0x1b9   : > { %3058 = vmatpush3.bf16.msra.mxu0 %v1112_v11 }
 0x1bb   : > { %2019 = vmatmul.mubr.bf16.vlgmr.msra.gmra.mrb[48].mxu1 %v3369_v14  ;;  %v3442_v14 = vld [vmem:[%s3709_s26 + $0x2dc] ss:$20 sps:$4 sm:$0xff]  }
 0x1bc   : > { %3060 = vmatmul.mubr.bf16.vlgmr.msra.gmra.mrb[112].mxu0 %v3373_v15  ;;  %2026 = vmatprep.mubr.bf16.mxu1 %v3374_v16 }
 0x1bd   : > { %3063 = vmatprep.mubr.bf16.mxu0 %v3380_v17 }
 0x1c3   : > { %2027 = vmatmul.mubr.bf16.gmra.mrb[52].mxu1 %v3376_v18  ;;  %v3445_v18 = vld [vmem:[%s3709_s26 + $0x2d8] ss:$20 sps:$4 sm:$0xff]  }
 0x1c4   : > { %2034 = vmatprep.mubr.bf16.mxu1 %v3377_v19  ;;  %3064 = vmatmul.mubr.bf16.gmra.mrb[116].mxu0 %v3381_v20  ;;  %v3446_v20 = vld [vmem:[%s3709_s26 + $0x304] ss:$20 sps:$4 sm:$0xff]  }
 0x1c5   : > { %3067 = vmatprep.mubr.bf16.mxu0 %v3388_v21 }
 0x1cb   : > { %2035 = vmatmul.mubr.bf16.gmra.mrb[56].mxu1 %v3379_v22 }
 0x1cc   : > { %2042 = vmatprep.mubr.bf16.mxu1 %v3382_v23  ;;  %3068 = vmatmul.mubr.bf16.gmra.mrb[120].mxu0 %v3389_v24  ;;  %v3448_v24 = vld [vmem:[%s3709_s26 + $0x300] ss:$20 sps:$4 sm:$0xff]   ;;  %s3198_s26 = smul.u32 320, %s3705_s22 }
 0x1cd   : > { %3071 = vmatprep.mubr.bf16.mxu0 %v3396_v25 }
 0x1ce   : > { %s4062_s13 = scalar_lea.vmem [#allocation6], %s3198_s26 }
 0x1cf   : > { %s2596_s6 = sshll.u32 %s4062_s13, 4  ;;  %s4232_s6 = int_to_ptr.vmem [resolvable:$true] %s2596_s6 }
 0x1d0   : > { %s3479_s9 = scalar_lea.vmem %s4232_s6, 5120  ;;  %p3486_p10 = scmp.lt.s32.totalorder %s4232_s6, %s3484_s12 }
 0x1d1   : > { %p3480_p8 = scmp.ne.s32.totalorder %s4232_s6, %s3479_s9  ;;  %p3487_p13 = scmp.lt.s32.totalorder %s3485_s21, %s3479_s9 }
 0x1d3   : > { %2043 = vmatmul.mubr.bf16.gmra.mrb[60].mxu1 %v3384_v26  ;;  %p3481_p11 = pnand %p3480_p8, %p4295_p9  ;;  %p3488_p1 = por %p3487_p13, %p3486_p10 }
 0x1d4   : > { %2050 = vmatprep.mubr.bf16.mxu1 %v3385_v28  ;;  %3072 = vmatmul.mubr.bf16.gmra.mrb[124].mxu0 %v3397_v29 }
 0x1d5   : > { %3075 = vmatprep.mubr.bf16.mxu0 %v3401_v30  ;;  %p3482_p0 = pneg %p3481_p11 }
 0x1d7   : > { %p3489_p3 = pnand %p3488_p1, %p3482_p0 }
 0x1db   : > { %2051 = vmatmul.mubr.bf16.gmra.mrb[64].mxu1 %v3387_v31 }
 0x1dc   : > { %2058 = vmatprep.mubr.bf16.mxu1 %v3390_v32  ;;  %3076 = vmatmul.mubr.bf16.gmra.mrb[128].mxu0 %v3404_v33 }
 0x1dd   : > { %3079 = vmatprep.mubr.bf16.mxu0 %v3409_v34 }
 0x1e3   : > { %2059 = vmatmul.mubr.bf16.gmra.mrb[68].mxu1 %v3392_v35 }
 0x1e4   : > { %2066 = vmatprep.mubr.bf16.mxu1 %v3393_v36  ;;  %3080 = vmatmul.mubr.bf16.gmra.mrb[132].mxu0 %v3412_v37 }
 0x1e5   : > { %3083 = vmatprep.mubr.bf16.mxu0 %v3417_v38 }
 0x1eb   : > { %2067 = vmatmul.mubr.bf16.gmra.mrb[72].mxu1 %v3395_v39 }
 0x1ec   : > { %2074 = vmatprep.mubr.bf16.mxu1 %v3398_v40  ;;  %3084 = vmatmul.mubr.bf16.gmra.mrb[136].mxu0 %v3420_v41 }
 0x1ed   : > { %3087 = vmatprep.mubr.bf16.mxu0 %v3425_v42 }
 0x1f3   : > { %2075 = vmatmul.mubr.bf16.gmra.mrb[76].mxu1 %v3400_v43 }
 0x1f4   : > { %2082 = vmatprep.mubr.bf16.mxu1 %v3402_v44  ;;  %3088 = vmatmul.mubr.bf16.gmra.mrb[140].mxu0 %v3428_v45 }
 0x1f5   : > { %3091 = vmatprep.mubr.bf16.mxu0 %v3433_v46 }
 0x1fb   : > { %2083 = vmatmul.mubr.bf16.gmra.mrb[0].mxu1 %v3405_v47  ;;  %v4059_v47 = vld [vmem:[%s4287_s3] ss:$0 sm:$0xff] }
 0x1fc   : > { %2090 = vmatprep.mubr.bf16.mxu1 %v3406_v48  ;;  %3092 = vmatmul.mubr.bf16.gmra.mrb[144].mxu0 %v3436_v49 }
 0x1fd   : > { %3095 = vmatprep.mubr.bf16.mxu0 %v3441_v50 }
 0x203   : > { %2091 = vmatmul.mubr.bf16.gmra.mrb[4].mxu1 %v3408_v51 }
 0x204   : > { %2098 = vmatprep.mubr.bf16.mxu1 %v3410_v52  ;;  %3096 = vmatmul.mubr.bf16.gmra.mrb[148].mxu0 %v3444_v53 }
 0x20b   : > { %2099 = vmatmul.mubr.bf16.gmra.mrb[8].mxu1 %v3413_v54 }
 0x20c   : > { %2106 = vmatprep.mubr.bf16.mxu1 %v3414_v55 }
 0x213   : > { %2107 = vmatmul.mubr.bf16.gmra.mrb[12].mxu1 %v3416_v27 }
 0x214   : > { %2114 = vmatprep.mubr.bf16.mxu1 %v3418_v56 }
 0x21b   : > { %2115 = vmatmul.mubr.bf16.gmra.mrb[16].mxu1 %v3421_v57 }
 0x21c   : > { %2122 = vmatprep.mubr.bf16.mxu1 %v3422_v58 }
 0x223   : > { %2123 = vmatmul.mubr.bf16.gmra.mrb[20].mxu1 %v3424_v59 }
 0x224   : > { %2130 = vmatprep.mubr.bf16.mxu1 %v3426_v60 }
 0x22b   : > { %2131 = vmatmul.mubr.bf16.gmra.mrb[24].mxu1 %v3429_v61 }
 0x22c   : > { %2138 = vmatprep.mubr.bf16.mxu1 %v3430_v62 }
 0x22e   : > { %v1827_v63 = vpop.f32.mrb[80].mxu0 }
 0x22f   : > { %v1829_v1 = vpop.f32.mrb[81].mxu0 }
 0x230   : > { %v1830_v3 = vpop.f32.mrb[82].mxu0 }
 0x231   : > { %v1832_v4 = vpop.f32.mrb[83].mxu0 }
 0x233   : > { %2139 = vmatmul.mubr.bf16.gmra.mrb[28].mxu1 %v3432_v0 }
 0x234   : > { %2146 = vmatprep.mubr.bf16.mxu1 %v3434_v2 }
 0x236   : > { %v1835_v5 = vpop.f32.mrb[84].mxu0 }
 0x237   : > { %v1837_v7 = vpop.f32.mrb[85].mxu0 }
 0x238   : > { %v4024_v9 = vpop.f32.mrb[86].mxu0 }
 0x239   : > { %v1840_v10 = vpop.f32.mrb[87].mxu0 }
 0x23b   : > { %2147 = vmatmul.mubr.bf16.gmra.mrb[32].mxu1 %v3437_v6 }
 0x23c   : > { %2154 = vmatprep.mubr.bf16.mxu1 %v3438_v8 }
 0x23e   : > { %v4026_v11 = vpop.f32.mrb[88].mxu0 }
 0x23f   : > { %v1845_v13 = vpop.f32.mrb[89].mxu0 }
 0x240   : > { %v4030_v15 = vpop.f32.mrb[90].mxu0 }
 0x241   : > { %v1848_v16 = vpop.f32.mrb[91].mxu0 }
 0x243   : > { %2155 = vmatmul.mubr.bf16.gmra.mrb[36].mxu1 %v3440_v12 }
 0x244   : > { %2162 = vmatprep.mubr.bf16.mxu1 %v3442_v14 }
 0x246   : > { %v4032_v17 = vpop.f32.mrb[92].mxu0 }
 0x247   : > { %v1853_v19 = vpop.f32.mrb[93].mxu0 }
 0x248   : > { %v4036_v21 = vpop.f32.mrb[94].mxu0 }
 0x249   : > { %v1856_v22 = vpop.f32.mrb[95].mxu0 }
 0x24b   : > { %2163 = vmatmul.mubr.bf16.gmra.mrb[40].mxu1 %v3445_v18 }
 0x24c   : > { %2170 = vmatprep.mubr.bf16.mxu1 %v3446_v20 }
 0x24e   : > { %v4038_v23 = vpop.f32.mrb[96].mxu0 }
 0x24f   : > { %v1861_v25 = vpop.f32.mrb[97].mxu0 }
 0x250   : > { %v4041_v26 = vpop.f32.mrb[98].mxu0 }
 0x251   : > { %v1864_v28 = vpop.f32.mrb[99].mxu0 }
 0x253   : > { %2171 = vmatmul.mubr.bf16.gmra.mrb[44].mxu1 %v3448_v24 }
 0x256   : > { %v4043_v29 = vpop.f32.mrb[100].mxu0 }
 0x257   : > { %v1869_v30 = vpop.f32.mrb[101].mxu0 }
 0x258   : > { %v4045_v31 = vpop.f32.mrb[102].mxu0 }
 0x259   : > { %v1872_v32 = vpop.f32.mrb[103].mxu0 }
 0x25e   : > { %v4047_v33 = vpop.f32.mrb[104].mxu0 }
 0x25f   : > { %v1877_v34 = vpop.f32.mrb[105].mxu0 }
 0x260   : > { %v4049_v35 = vpop.f32.mrb[106].mxu0 }
 0x261   : > { %v1880_v36 = vpop.f32.mrb[107].mxu0 }
 0x266   : > { %v4051_v37 = vpop.f32.mrb[108].mxu0 }
 0x267   : > { %v1885_v38 = vpop.f32.mrb[109].mxu0 }
 0x268   : > { %v4053_v39 = vpop.f32.mrb[110].mxu0 }
 0x269   : > { %v1888_v40 = vpop.f32.mrb[111].mxu0 }
 0x28e   : > { %v2020_v41 = vpop.f32.mrb[48].mxu1 }
 0x28f   : > { %v2021_v42 = vadd.f32 %v2020_v41, %v1827_v63  ;;  %v2022_v43 = vpop.f32.mrb[49].mxu1  ;;  %v3061_v44 = vpop.f32.mrb[112].mxu0 }
 0x290   : > { %v2023_v45 = vpop.f32.mrb[50].mxu1  ;;  %v2213_v46 = vpop.f32.mrb[113].mxu0 }
 0x291   : > { %v2024_v48 = vadd.f32 %v2023_v45, %v1830_v3  ;;  %v2214_v49 = vadd.f32 %v2213_v46, %v2021_v42  ;;  %v2025_v50 = vpop.f32.mrb[51].mxu1  ;;  %v3062_v51 = vpop.f32.mrb[114].mxu0 }
 0x292   : > { %v2216_v52 = vpop.f32.mrb[115].mxu0 }
 0x293   : > { %v2502_v53 = vadd.f32 %v4059_v47, %v2214_v49  ;;  %v2217_v54 = vadd.f32 %v2216_v52, %v2024_v48 }
 0x295   : > { %2542 = vst [vmem:[%s4062_s13] sm:$0xff] %v2502_v53  ;;  %v2503_v55 = vadd.f32 %v4059_v47, %v2217_v54 }
 0x296   : > { %v2028_v27 = vpop.f32.mrb[52].mxu1 }
 0x297   : > { %2543 = vst [vmem:[%s4062_s13 + $0x8] sm:$0xff] %v2503_v55  ;;  %v2029_v56 = vadd.f32 %v2028_v27, %v1835_v5  ;;  %v2030_v57 = vpop.f32.mrb[53].mxu1  ;;  %v3065_v58 = vpop.f32.mrb[116].mxu0 }
 0x298   : > { %v2031_v59 = vpop.f32.mrb[54].mxu1  ;;  %v2229_v60 = vpop.f32.mrb[117].mxu0 }
 0x299   : > { %v2222_v61 = vadd.f32 %v3061_v44, %v2029_v56  ;;  %v2032_v62 = vadd.f32 %v2031_v59, %v4024_v9  ;;  %v2033_v63 = vpop.f32.mrb[55].mxu1  ;;  %v3066_v0 = vpop.f32.mrb[118].mxu0 }
 0x29a   : > { %v2232_v1 = vpop.f32.mrb[119].mxu0 }
 0x29b   : > { %v2504_v2 = vadd.f32 %v4059_v47, %v2222_v61  ;;  %v2225_v3 = vadd.f32 %v3062_v51, %v2032_v62 }
 0x29d   : > { %2544 = vst [vmem:[%s4062_s13 + $0x10] sm:$0xff] %v2504_v2  ;;  %v2505_v4 = vadd.f32 %v4059_v47, %v2225_v3 }
 0x29e   : > { %v2036_v6 = vpop.f32.mrb[56].mxu1 }
 0x29f   : > { %2545 = vst [vmem:[%s4062_s13 + $0x18] sm:$0xff] %v2505_v4  ;;  %v2037_v5 = vadd.f32 %v2036_v6, %v4026_v11  ;;  %v2038_v7 = vpop.f32.mrb[57].mxu1  ;;  %v3069_v8 = vpop.f32.mrb[120].mxu0 }
 0x2a0   : > { %v2039_v10 = vpop.f32.mrb[58].mxu1  ;;  %v2245_v12 = vpop.f32.mrb[121].mxu0 }
 0x2a1   : > { %v2040_v9 = vadd.f32 %v2039_v10, %v4030_v15  ;;  %v2230_v13 = vadd.f32 %v2229_v60, %v2037_v5  ;;  %v2041_v14 = vpop.f32.mrb[59].mxu1  ;;  %v3070_v16 = vpop.f32.mrb[122].mxu0 }
 0x2a2   : > { %v2248_v18 = vpop.f32.mrb[123].mxu0 }
 0x2a3   : > { %v2506_v19 = vadd.f32 %v4059_v47, %v2230_v13  ;;  %v2233_v20 = vadd.f32 %v2232_v1, %v2040_v9 }
 0x2a5   : > { %2546 = vst [vmem:[%s4062_s13 + $0x20] sm:$0xff] %v2506_v19  ;;  %v2507_v22 = vadd.f32 %v4059_v47, %v2233_v20 }
 0x2a6   : > { %v2044_v24 = vpop.f32.mrb[60].mxu1 }
 0x2a7   : > { %2547 = vst [vmem:[%s4062_s13 + $0x28] sm:$0xff] %v2507_v22  ;;  %v2045_v11 = vadd.f32 %v2044_v24, %v4032_v17  ;;  %v2046_v25 = vpop.f32.mrb[61].mxu1  ;;  %v4079_v28 = vpop.f32.mrb[124].mxu0 }
 0x2a8   : > { %v2047_v15 = vpop.f32.mrb[62].mxu1  ;;  %v2261_v30 = vpop.f32.mrb[125].mxu0 }
 0x2a9   : > { %v2238_v32 = vadd.f32 %v3065_v58, %v2045_v11  ;;  %v2048_v34 = vadd.f32 %v2047_v15, %v4036_v21  ;;  %v2049_v36 = vpop.f32.mrb[63].mxu1  ;;  %v4082_v38 = vpop.f32.mrb[126].mxu0 }
 0x2aa   : > { %v2264_v40 = vpop.f32.mrb[127].mxu0 }
 0x2ab   : > { %v2508_v41 = vadd.f32 %v4059_v47, %v2238_v32  ;;  %v2241_v42 = vadd.f32 %v3066_v0, %v2048_v34 }
 0x2ad   : > { %2548 = vst [vmem:[%s4062_s13 + $0x30] sm:$0xff] %v2508_v41  ;;  %v2509_v43 = vadd.f32 %v4059_v47, %v2241_v42 }
 0x2ae   : > { %v2052_v17 = vpop.f32.mrb[64].mxu1 }
 0x2af   : > { %2549 = vst [vmem:[%s4062_s13 + $0x38] sm:$0xff] %v2509_v43  ;;  %v2053_v44 = vadd.f32 %v2052_v17, %v4038_v23  ;;  %v2054_v45 = vpop.f32.mrb[65].mxu1  ;;  %v4089_v46 = vpop.f32.mrb[128].mxu0 }
 0x2b0   : > { %v2055_v21 = vpop.f32.mrb[66].mxu1  ;;  %v2277_v48 = vpop.f32.mrb[129].mxu0 }
 0x2b1   : > { %v2056_v49 = vadd.f32 %v2055_v21, %v4041_v26  ;;  %v2246_v50 = vadd.f32 %v2245_v12, %v2053_v44  ;;  %v2057_v51 = vpop.f32.mrb[67].mxu1  ;;  %v4092_v52 = vpop.f32.mrb[130].mxu0 }
 0x2b2   : > { %v2280_v53 = vpop.f32.mrb[131].mxu0 }
 0x2b3   : > { %v2510_v54 = vadd.f32 %v4059_v47, %v2246_v50  ;;  %v2249_v55 = vadd.f32 %v2248_v18, %v2056_v49 }
 0x2b5   : > { %2550 = vst [vmem:[%s4062_s13 + $0x40] sm:$0xff] %v2510_v54  ;;  %v2511_v27 = vadd.f32 %v4059_v47, %v2249_v55 }
 0x2b6   : > { %v2060_v23 = vpop.f32.mrb[68].mxu1 }
 0x2b7   : > { %2551 = vst [vmem:[%s4062_s13 + $0x48] sm:$0xff] %v2511_v27  ;;  %v2061_v56 = vadd.f32 %v2060_v23, %v4043_v29  ;;  %v2062_v57 = vpop.f32.mrb[69].mxu1  ;;  %v4099_v58 = vpop.f32.mrb[132].mxu0 }
 0x2b8   : > { %v2063_v26 = vpop.f32.mrb[70].mxu1  ;;  %v4101_v59 = vpop.f32.mrb[133].mxu0 }
 0x2b9   : > { %v2254_v60 = vadd.f32 %v3069_v8, %v2061_v56  ;;  %v2064_v61 = vadd.f32 %v2063_v26, %v4045_v31  ;;  %v2065_v62 = vpop.f32.mrb[71].mxu1  ;;  %v4104_v63 = vpop.f32.mrb[134].mxu0 }
 0x2ba   : > { %v4106_v0 = vpop.f32.mrb[135].mxu0 }
 0x2bb   : > { %v2512_v1 = vadd.f32 %v4059_v47, %v2254_v60  ;;  %v2257_v2 = vadd.f32 %v3070_v16, %v2064_v61 }
 0x2bd   : > { %2552 = vst [vmem:[%s4062_s13 + $0x50] sm:$0xff] %v2512_v1  ;;  %v2513_v29 = vadd.f32 %v4059_v47, %v2257_v2 }
 0x2be   : > { %v2068_v3 = vpop.f32.mrb[72].mxu1 }
 0x2bf   : > { %2553 = vst [vmem:[%s4062_s13 + $0x58] sm:$0xff] %v2513_v29  ;;  %v2069_v4 = vadd.f32 %v2068_v3, %v4047_v33  ;;  %v2070_v6 = vpop.f32.mrb[73].mxu1  ;;  %v4113_v5 = vpop.f32.mrb[136].mxu0 }
 0x2c0   : > { %v2071_v31 = vpop.f32.mrb[74].mxu1  ;;  %v4115_v7 = vpop.f32.mrb[137].mxu0 }
 0x2c1   : > { %v2072_v8 = vadd.f32 %v2071_v31, %v4049_v35  ;;  %v2262_v10 = vadd.f32 %v2261_v30, %v2069_v4  ;;  %v2073_v12 = vpop.f32.mrb[75].mxu1  ;;  %v4118_v9 = vpop.f32.mrb[138].mxu0 }
 0x2c2   : > { %v4120_v13 = vpop.f32.mrb[139].mxu0 }
 0x2c3   : > { %v2514_v14 = vadd.f32 %v4059_v47, %v2262_v10  ;;  %v2265_v16 = vadd.f32 %v2264_v40, %v2072_v8 }
 0x2c5   : > { %2554 = vst [vmem:[%s4062_s13 + $0x60] sm:$0xff] %v2514_v14  ;;  %v2515_v33 = vadd.f32 %v4059_v47, %v2265_v16 }
 0x2c6   : > { %v2076_v18 = vpop.f32.mrb[76].mxu1 }
 0x2c7   : > { %2555 = vst [vmem:[%s4062_s13 + $0x68] sm:$0xff] %v2515_v33  ;;  %v2077_v19 = vadd.f32 %v2076_v18, %v4051_v37  ;;  %v2078_v20 = vpop.f32.mrb[77].mxu1  ;;  %v4127_v35 = vpop.f32.mrb[140].mxu0 }
 0x2c8   : > { %v2079_v22 = vpop.f32.mrb[78].mxu1  ;;  %v4129_v24 = vpop.f32.mrb[141].mxu0 }
 0x2c9   : > { %v2270_v11 = vadd.f32 %v4079_v28, %v2077_v19  ;;  %v2080_v25 = vadd.f32 %v2079_v22, %v4053_v39  ;;  %v2081_v15 = vpop.f32.mrb[79].mxu1  ;;  %v4133_v30 = vpop.f32.mrb[142].mxu0 }
 0x2ca   : > { %v4135_v32 = vpop.f32.mrb[143].mxu0 }
 0x2cb   : > { %v2516_v34 = vadd.f32 %v4059_v47, %v2270_v11  ;;  %v2273_v37 = vadd.f32 %v4082_v38, %v2080_v25 }
 0x2cd   : > { %2556 = vst [vmem:[%s4062_s13 + $0x70] sm:$0xff] %v2516_v34  ;;  %v2517_v36 = vadd.f32 %v4059_v47, %v2273_v37 }
 0x2ce   : > { %v2084_v40 = vpop.f32.mrb[0].mxu1 }
 0x2cf   : > { %2557 = vst [vmem:[%s4062_s13 + $0x78] sm:$0xff] %v2517_v36  ;;  %v2278_v41 = vadd.f32 %v2277_v48, %v2084_v40  ;;  %v2086_v28 = vpop.f32.mrb[1].mxu1  ;;  %v4142_v42 = vpop.f32.mrb[144].mxu0 }
 0x2d0   : > { %v2087_v39 = vpop.f32.mrb[2].mxu1  ;;  %v4144_v43 = vpop.f32.mrb[145].mxu0 }
 0x2d1   : > { %v2518_v17 = vadd.f32 %v4059_v47, %v2278_v41  ;;  %v2281_v44 = vadd.f32 %v2280_v53, %v2087_v39  ;;  %v2089_v45 = vpop.f32.mrb[3].mxu1  ;;  %v4147_v21 = vpop.f32.mrb[146].mxu0 }
 0x2d2   : > { %v4149_v38 = vpop.f32.mrb[147].mxu0 }
 0x2d3   : > { %2558 = vst [vmem:[%s4062_s13 + $0x80] sm:$0xff] %v2518_v17  ;;  %v2519_v49 = vadd.f32 %v4059_v47, %v2281_v44 }
 0x2d5   : > { %2559 = vst [vmem:[%s4062_s13 + $0x88] sm:$0xff] %v2519_v49 }
 0x2d6   : > { %v2092_v48 = vpop.f32.mrb[4].mxu1 }
 0x2d7   : > { %v2286_v50 = vadd.f32 %v4089_v46, %v2092_v48  ;;  %v2094_v51 = vpop.f32.mrb[5].mxu1  ;;  %v4155_v54 = vpop.f32.mrb[148].mxu0 }
 0x2d8   : > { %v2095_v55 = vpop.f32.mrb[6].mxu1  ;;  %v4157_v27 = vpop.f32.mrb[149].mxu0 }
 0x2d9   : > { %v2520_v53 = vadd.f32 %v4059_v47, %v2286_v50  ;;  %v2289_v23 = vadd.f32 %v4092_v52, %v2095_v55  ;;  %v2097_v56 = vpop.f32.mrb[7].mxu1  ;;  %v4161_v57 = vpop.f32.mrb[150].mxu0 }
 0x2da   : > { %v4163_v26 = vpop.f32.mrb[151].mxu0 }
 0x2db   : > { %2560 = vst [vmem:[%s4062_s13 + $0x90] sm:$0xff] %v2520_v53  ;;  %v2521_v46 = vadd.f32 %v4059_v47, %v2289_v23 }
 0x2dd   : > { %2561 = vst [vmem:[%s4062_s13 + $0x98] sm:$0xff] %v2521_v46 }
 0x2de   : > { %v2100_v60 = vpop.f32.mrb[8].mxu1 }
 0x2df   : > { %v2294_v61 = vadd.f32 %v4101_v59, %v2100_v60  ;;  %v2102_v62 = vpop.f32.mrb[9].mxu1 }
 0x2e0   : > { %v2103_v1 = vpop.f32.mrb[10].mxu1 }
 0x2e1   : > { %v2522_v2 = vadd.f32 %v4059_v47, %v2294_v61  ;;  %v2297_v52 = vadd.f32 %v4106_v0, %v2103_v1  ;;  %v2105_v29 = vpop.f32.mrb[11].mxu1 }
 0x2e3   : > { %2562 = vst [vmem:[%s4062_s13 + $0xa0] sm:$0xff] %v2522_v2  ;;  %v2523_v3 = vadd.f32 %v4059_v47, %v2297_v52 }
 0x2e5   : > { %2563 = vst [vmem:[%s4062_s13 + $0xa8] sm:$0xff] %v2523_v3 }
 0x2e6   : > { %v2108_v4 = vpop.f32.mrb[12].mxu1 }
 0x2e7   : > { %v2302_v6 = vadd.f32 %v4099_v58, %v2108_v4  ;;  %v2110_v31 = vpop.f32.mrb[13].mxu1 }
 0x2e8   : > { %v2111_v8 = vpop.f32.mrb[14].mxu1 }
 0x2e9   : > { %v2524_v59 = vadd.f32 %v4059_v47, %v2302_v6  ;;  %v2305_v10 = vadd.f32 %v4104_v63, %v2111_v8  ;;  %v2113_v12 = vpop.f32.mrb[15].mxu1 }
 0x2eb   : > { %2564 = vst [vmem:[%s4062_s13 + $0xb0] sm:$0xff] %v2524_v59  ;;  %v2525_v0 = vadd.f32 %v4059_v47, %v2305_v10 }
 0x2ed   : > { %2565 = vst [vmem:[%s4062_s13 + $0xb8] sm:$0xff] %v2525_v0 }
 0x2ee   : > { %v2116_v14 = vpop.f32.mrb[16].mxu1 }
 0x2ef   : > { %v2310_v16 = vadd.f32 %v4115_v7, %v2116_v14  ;;  %v2118_v33 = vpop.f32.mrb[17].mxu1 }
 0x2f0   : > { %v2119_v18 = vpop.f32.mrb[18].mxu1 }
 0x2f1   : > { %v2526_v58 = vadd.f32 %v4059_v47, %v2310_v16  ;;  %v2313_v19 = vadd.f32 %v4120_v13, %v2119_v18  ;;  %v2121_v20 = vpop.f32.mrb[19].mxu1 }
 0x2f3   : > { %2566 = vst [vmem:[%s4062_s13 + $0xc0] sm:$0xff] %v2526_v58  ;;  %v2527_v63 = vadd.f32 %v4059_v47, %v2313_v19 }
 0x2f5   : > { %2567 = vst [vmem:[%s4062_s13 + $0xc8] sm:$0xff] %v2527_v63 }
 0x2f6   : > { %v2124_v22 = vpop.f32.mrb[20].mxu1 }
 0x2f7   : > { %v2318_v11 = vadd.f32 %v4113_v5, %v2124_v22  ;;  %v2126_v25 = vpop.f32.mrb[21].mxu1 }
 0x2f8   : > { %v2127_v15 = vpop.f32.mrb[22].mxu1 }
 0x2f9   : > { %v2528_v7 = vadd.f32 %v4059_v47, %v2318_v11  ;;  %v2321_v34 = vadd.f32 %v4118_v9, %v2127_v15  ;;  %v2129_v37 = vpop.f32.mrb[23].mxu1 }
 0x2fb   : > { %2568 = vst [vmem:[%s4062_s13 + $0xd0] sm:$0xff] %v2528_v7  ;;  %v2529_v13 = vadd.f32 %v4059_v47, %v2321_v34 }
 0x2fd   : > { %2569 = vst [vmem:[%s4062_s13 + $0xd8] sm:$0xff] %v2529_v13 }
 0x2fe   : > { %v2132_v36 = vpop.f32.mrb[24].mxu1 }
 0x2ff   : > { %v2326_v40 = vadd.f32 %v4129_v24, %v2132_v36  ;;  %v2134_v41 = vpop.f32.mrb[25].mxu1 }
 0x300   : > { %v2135_v28 = vpop.f32.mrb[26].mxu1 }
 0x301   : > { %v2530_v5 = vadd.f32 %v4059_v47, %v2326_v40  ;;  %v2329_v39 = vadd.f32 %v4135_v32, %v2135_v28  ;;  %v2137_v17 = vpop.f32.mrb[27].mxu1 }
 0x303   : > { %2570 = vst [vmem:[%s4062_s13 + $0xe0] sm:$0xff] %v2530_v5  ;;  %v2531_v9 = vadd.f32 %v4059_v47, %v2329_v39 }
 0x305   : > { %2571 = vst [vmem:[%s4062_s13 + $0xe8] sm:$0xff] %v2531_v9 }
 0x306   : > { %v2140_v44 = vpop.f32.mrb[28].mxu1 }
 0x307   : > { %v2334_v45 = vadd.f32 %v4127_v35, %v2140_v44  ;;  %v2142_v49 = vpop.f32.mrb[29].mxu1 }
 0x308   : > { %v2143_v48 = vpop.f32.mrb[30].mxu1 }
 0x309   : > { %v2532_v24 = vadd.f32 %v4059_v47, %v2334_v45  ;;  %v2337_v50 = vadd.f32 %v4133_v30, %v2143_v48  ;;  %v2145_v51 = vpop.f32.mrb[31].mxu1 }
 0x30b   : > { %2572 = vst [vmem:[%s4062_s13 + $0xf0] sm:$0xff] %v2532_v24  ;;  %v2533_v32 = vadd.f32 %v4059_v47, %v2337_v50 }
 0x30d   : > { %2573 = vst [vmem:[%s4062_s13 + $0xf8] sm:$0xff] %v2533_v32 }
 0x30e   : > { %v2148_v55 = vpop.f32.mrb[32].mxu1 }
 0x30f   : > { %v2342_v53 = vadd.f32 %v4144_v43, %v2148_v55  ;;  %v2150_v23 = vpop.f32.mrb[33].mxu1 }
 0x310   : > { %v2151_v56 = vpop.f32.mrb[34].mxu1 }
 0x311   : > { %v2534_v35 = vadd.f32 %v4059_v47, %v2342_v53  ;;  %v2345_v46 = vadd.f32 %v4149_v38, %v2151_v56  ;;  %v2153_v60 = vpop.f32.mrb[35].mxu1 }
 0x313   : > { %2574 = vst [vmem:[%s4062_s13 + $0x100] sm:$0xff] %v2534_v35  ;;  %v2535_v30 = vadd.f32 %v4059_v47, %v2345_v46 }
 0x315   : > { %2575 = vst [vmem:[%s4062_s13 + $0x108] sm:$0xff] %v2535_v30 }
 0x316   : > { %v2156_v61 = vpop.f32.mrb[36].mxu1 }
 0x317   : > { %v2350_v62 = vadd.f32 %v4142_v42, %v2156_v61  ;;  %v2158_v1 = vpop.f32.mrb[37].mxu1 }
 0x318   : > { %v2159_v2 = vpop.f32.mrb[38].mxu1 }
 0x319   : > { %v2536_v43 = vadd.f32 %v4059_v47, %v2350_v62  ;;  %v2353_v52 = vadd.f32 %v4147_v21, %v2159_v2  ;;  %v2161_v29 = vpop.f32.mrb[39].mxu1 }
 0x31b   : > { %2576 = vst [vmem:[%s4062_s13 + $0x110] sm:$0xff] %v2536_v43  ;;  %v2537_v38 = vadd.f32 %v4059_v47, %v2353_v52 }
 0x31d   : > { %2577 = vst [vmem:[%s4062_s13 + $0x118] sm:$0xff] %v2537_v38 }
 0x31e   : > { %v2164_v3 = vpop.f32.mrb[40].mxu1 }
 0x31f   : > { %v2358_v4 = vadd.f32 %v4157_v27, %v2164_v3  ;;  %v2166_v6 = vpop.f32.mrb[41].mxu1 }
 0x320   : > { %v2167_v42 = vpop.f32.mrb[42].mxu1 }
 0x321   : > { %v2538_v31 = vadd.f32 %v4059_v47, %v2358_v4  ;;  %v2361_v8 = vadd.f32 %v4163_v26, %v2167_v42  ;;  %v2169_v59 = vpop.f32.mrb[43].mxu1 }
 0x323   : > { %2578 = vst [vmem:[%s4062_s13 + $0x120] sm:$0xff] %v2538_v31  ;;  %v2539_v21 = vadd.f32 %v4059_v47, %v2361_v8 }
 0x325   : > { %2579 = vst [vmem:[%s4062_s13 + $0x128] sm:$0xff] %v2539_v21 }
 0x326   : > { %v2172_v10 = vpop.f32.mrb[44].mxu1 }
 0x327   : > { %v2366_v12 = vadd.f32 %v4155_v54, %v2172_v10  ;;  %v2174_v27 = vpop.f32.mrb[45].mxu1 }
 0x328   : > { %v2175_v0 = vpop.f32.mrb[46].mxu1 }
 0x329   : > { %v2540_v14 = vadd.f32 %v4059_v47, %v2366_v12  ;;  %v2369_v26 = vadd.f32 %v4161_v57, %v2175_v0  ;;  %v2177_v16 = vpop.f32.mrb[47].mxu1 }
 0x32b   : > { %2580 = vst [vmem:[%s4062_s13 + $0x130] sm:$0xff] %v2540_v14  ;;  %v2541_v54 = vadd.f32 %v4059_v47, %v2369_v26 }
 0x32d   : > { %2581 = vst [vmem:[%s4062_s13 + $0x138] sm:$0xff] %v2541_v54 }
 0x32e   : > { %3492 = shalt.err (!%p3489_p3)
}
 0x32f   : > { %s3493_s24 = scalar_lea.hbm %s4230_s8, 5120  ;;  %s3497_s7 = scalar_lea.hbm %s4288_s4, 10240 }
 0x330   : > { %p3494_p5 = scmp.ne.s32.totalorder %s4230_s8, %s3493_s24  ;;  %p3498_p12 = scmp.lt.u32.totalorder %s4230_s8, %s4288_s4 }
 0x331   : > { %p3499_p2 = scmp.lt.u32.totalorder %s3497_s7, %s3493_s24  ;;  %p3501_p8 = scmp.lt.u32.totalorder %s3493_s24, %s4230_s8 }
 0x332   : > { %p3495_p6 = pnand %p3494_p5, %p4295_p9 }
 0x333   : > { %p3500_p4 = por %p3499_p2, %p3498_p12 }
 0x334   : > { %p3496_p7 = pneg %p3495_p6 }
 0x335   : > { %p3502_p11 = por %p3501_p8, %p3500_p4 }
 0x337   : > { %p3503_p0 = pnand %p3502_p11, %p3496_p7 }
 0x339   : > { %3506 = shalt.err (!%p3503_p0)
}
 0x33a   : > { %s3568_s14 = smov 128   ;;  %s3569_s5 = smov 8  }
 0x33b   : > { %3201 = dma.vmem_to_hbm [thread:$0]  (%p4295_p9), %s4232_s6, 5120, %s4230_s8, %s2583_s18, %s3568_s14, %s3568_s14, %s3569_s5  }
 0x33c PF: > { %s2611_s27 = sand.u32 1, %s3541_s15   ;;  %p4296_p10 = scmp.ne.s32.totalorder %s4293_s30, 0 }
 0x33d   : > { %p4297_p13 = scmp.ge.s32.totalorder %s3561_s20, 2  ;;  %s2612_s9 = scalar_lea.sflag [#allocation5], %s2611_s27 }
 0x33f   : > { %p3208_p1 = pnand %p4297_p13, %p4296_p10 }
 0x341   : > { %3536 = dma.done.wait (!%p3208_p1), %s2612_s9, 5120  }
 0x342   : > { %3538 = vsyncadd (!%p3208_p1), %s2612_s9, 4294962176  ;;  %s20_s20 = sadd.s32 1, %s3561_s20   ;;  %s4298_s15 = smov %s3545_s16 }
 0x343   : > { %p17_p3 = scmp.ge.s32.totalorder %s20_s20, 4   ;;  %s4299_s16 = smov %s3549_s17 }
 0x344   : > { %s4300_s17 = smov %s3651_s29  ;;  %s4301_s18 = smov %s3557_s19 }
 0x345   : > { %s4302_s19 = smov %s4304_s23  ;;  %19 = sbr.rel (!%p17_p3) target bundleno = 6 (0x6), region = 92 }
 0x34c   :  { %2617 = vsyncpa [#allocation4], 1 }
 0x34d   :  { %2619 = vsyncpa [#allocation4 + $0x1], 1 }
 0x34e   :  { %2620 = vsyncpa [#allocation5], 1 }
 0x34f   :  { %2622 = vsyncpa [#allocation5 + $0x1], 1 }

</bundles_post_ra>
